<compile_context>
chip_gen: v5e
topology: v5e:2x2
jax: 0.10.0
libtpu: 0.0.40
codegen_flags: <defaults>
</compile_context>

<pallas_src>
import jax
import jax.numpy as jnp
from jax.experimental import pallas as pl
from jax.experimental.pallas import tpu as pltpu


EPS = 1e-5


def _make_prenorm_kernel(d_real: int, d_pad: int):
    """Build the kernel with the real / padded feature dims baked in."""

    inv_d = 1.0 / float(d_real)

    def prenorm_kernel(x_ref, gamma_ref, beta_ref, w_ref, b_ref, o_ref):
        # ---- LayerNorm over the (real) last dim, f32 statistics ----
        x = x_ref[...].astype(jnp.float32)                 # (tile_rows, d_pad)

        # Padded lanes of x are zero, so the sum is already over real lanes.
        mean = jnp.sum(x, axis=-1, keepdims=True) * inv_d
        centered = x - mean
        if d_real != d_pad:
            # Mask padded lanes out of the variance (and of xn downstream).
            lane = jax.lax.broadcasted_iota(jnp.int32, x.shape, 1)
            centered = jnp.where(lane < d_real, centered, 0.0)
        var = jnp.sum(centered * centered, axis=-1, keepdims=True) * inv_d
        xn = centered * jax.lax.rsqrt(var + EPS)

        # gamma/beta are pre-cast to f32 in the wrapper; padded lanes are 0,
        # so y's padded lanes are exactly 0 and contribute nothing to the dot.
        y = xn * gamma_ref[...] + beta_ref[...]

        # ---- fn: Linear(dim, dim) on the MXU, bf16 in / f32 accumulate ----
        out = jnp.dot(y.astype(jnp.bfloat16), w_ref[...],
                      preferred_element_type=jnp.float32)
        out = out + b_ref[...]

        o_ref[...] = out.astype(o_ref.dtype)

    return prenorm_kernel


def prenorm_linear(x, gamma, beta, w, b, *, tile_rows=256):
    """PreNorm(dim, Linear(dim, dim)):  x (B, N, D) -> (B, N, D)."""
    B, N, D = x.shape
    rows = B * N

    # Lane-dense padded feature width (multiple of 128) and padded row count.
    d_pad = max(128, pl.cdiv(D, 128) * 128)
    rows_p = pl.cdiv(rows, tile_rows) * tile_rows

    # Pad in the wrapper (zeros); hoist invariant-operand casts here too.
    x2 = jnp.pad(x.reshape(rows, D), ((0, rows_p - rows), (0, d_pad - D)))
    gamma2 = jnp.pad(gamma.astype(jnp.float32), (0, d_pad - D)).reshape(1, d_pad)
    beta2 = jnp.pad(beta.astype(jnp.float32), (0, d_pad - D)).reshape(1, d_pad)
    w2 = jnp.pad(w.astype(jnp.bfloat16), ((0, d_pad - D), (0, d_pad - D)))
    b2 = jnp.pad(b.astype(jnp.float32), (0, d_pad - D)).reshape(1, d_pad)

    kernel = _make_prenorm_kernel(D, d_pad)

    out = pl.pallas_call(
        kernel,
        out_shape=jax.ShapeDtypeStruct((rows_p, d_pad), x.dtype),
        grid_spec=pltpu.PrefetchScalarGridSpec(
            num_scalar_prefetch=0,
            grid=(rows_p // tile_rows,),
            in_specs=[
                pl.BlockSpec((tile_rows, d_pad), lambda i: (i, 0)),  # x rows
                pl.BlockSpec((1, d_pad), lambda i: (0, 0)),          # gamma
                pl.BlockSpec((1, d_pad), lambda i: (0, 0)),          # beta
                pl.BlockSpec((d_pad, d_pad), lambda i: (0, 0)),      # W (bf16)
                pl.BlockSpec((1, d_pad), lambda i: (0, 0)),          # bias
            ],
            out_specs=pl.BlockSpec((tile_rows, d_pad), lambda i: (i, 0)),
        ),
        compiler_params=pltpu.CompilerParams(
            dimension_semantics=("parallel",),        # shards rows over 2 TCs on v7x
            vmem_limit_bytes=48 * 1024 * 1024,        # headroom below v7x's 64 MiB
        ),
    )(x2, gamma2, beta2, w2, b2)

    return out[:rows, :D].reshape(B, N, D)


def prenorm_reference(x, gamma, beta, w, b):
    xf = x.astype(jnp.float32)
    mean = jnp.mean(xf, axis=-1, keepdims=True)
    var = jnp.mean((xf - mean) ** 2, axis=-1, keepdims=True)
    xn = (xf - mean) / jnp.sqrt(var + EPS)
    y = xn * gamma + beta
    return (y @ w + b).astype(x.dtype)


if __name__ == "__main__":
    key = jax.random.PRNGKey(0)
    k_x, k_w, k_b = jax.random.split(key, 3)

    B, N, D = 2, 8, 32          # batch=2, seq=8, dim=32 (small demo shapes)
    x = jax.random.normal(k_x, (B, N, D), dtype=jnp.float32)

    # nn.LayerNorm(dim) params: weight=ones, bias=zeros (PyTorch default init)
    gamma = jnp.ones((D,), dtype=jnp.float32)
    beta = jnp.zeros((D,), dtype=jnp.float32)

    # fn = Linear(dim, dim), deterministic synthetic weights
    w = jax.random.normal(k_w, (D, D), dtype=jnp.float32) * 0.02
    b = jax.random.normal(k_b, (D,), dtype=jnp.float32) * 0.01

    out = prenorm_linear(x, gamma, beta, w, b)
    out = jax.block_until_ready(out)

    ref = prenorm_reference(x, gamma, beta, w, b)
    assert out.shape == (B, N, D)
    # bf16 MXU operands (f32 accumulate) -> slightly looser tolerance.
    assert jnp.allclose(out, ref, atol=1e-2, rtol=1e-2)

    print("KERNEL_OK")
</pallas_src>

<mosaic_0001>
module attributes {stable_mosaic.version = 11 : i64} {
  func.func @prenorm_kernel(%arg0: i32, %arg1: memref<256x128xf32, #tpu.memory_space<vmem>>, %arg2: memref<1x128xf32, #tpu.memory_space<vmem>>, %arg3: memref<1x128xf32, #tpu.memory_space<vmem>>, %arg4: memref<128x128xbf16, #tpu.memory_space<vmem>>, %arg5: memref<1x128xf32, #tpu.memory_space<vmem>>, %arg6: memref<256x128xf32, #tpu.memory_space<vmem>>) attributes {dimension_semantics = [#tpu.dimension_semantics<parallel>], iteration_bounds = array<i64: 1>, scalar_prefetch = 0 : i64, scratch_operands = 0 : i64, tpu.core_type = #tpu.core_type<tc>, window_params = [{transform_indices = @transform_0, window_bounds = array<i64: 256, 128>}, {pipeline_mode = #tpu.pipeline_mode<synchronous>, transform_indices = @transform_1, window_bounds = array<i64: 1, 128>}, {pipeline_mode = #tpu.pipeline_mode<synchronous>, transform_indices = @transform_2, window_bounds = array<i64: 1, 128>}, {pipeline_mode = #tpu.pipeline_mode<synchronous>, transform_indices = @transform_3, window_bounds = array<i64: 128, 128>}, {pipeline_mode = #tpu.pipeline_mode<synchronous>, transform_indices = @transform_4, window_bounds = array<i64: 1, 128>}, {transform_indices = @transform_5, window_bounds = array<i64: 256, 128>}]} {
    %c0 = arith.constant 0 : index
    %c0_0 = arith.constant 0 : index
    %0 = vector.load %arg1[%c0, %c0_0] : memref<256x128xf32, #tpu.memory_space<vmem>>, vector<256x128xf32>
    %cst = arith.constant dense<0.000000e+00> : vector<256xf32>
    %1 = vector.multi_reduction <add>, %0, %cst [1] : vector<256x128xf32> to vector<256xf32>
    %2 = vector.shape_cast %1 : vector<256xf32> to vector<256x1xf32>
    %cst_1 = arith.constant 3.125000e-02 : f32
    %3 = vector.broadcast %cst_1 : f32 to vector<256x1xf32>
    %4 = arith.mulf %2, %3 : vector<256x1xf32>
    %5 = vector.broadcast %4 : vector<256x1xf32> to vector<256x128xf32>
    %6 = arith.subf %0, %5 : vector<256x128xf32>
    %7 = tpu.iota {dimensions = array<i32: 1>} : vector<256x128xi32>
    %c32_i32 = arith.constant 32 : i32
    %8 = vector.broadcast %c32_i32 : i32 to vector<256x128xi32>
    %9 = arith.cmpi slt, %7, %8 : vector<256x128xi32>
    %cst_2 = arith.constant 0.000000e+00 : f32
    %10 = vector.broadcast %cst_2 : f32 to vector<256x128xf32>
    %11 = arith.select %9, %6, %10 : vector<256x128xi1>, vector<256x128xf32>
    %12 = arith.mulf %11, %11 : vector<256x128xf32>
    %cst_3 = arith.constant dense<0.000000e+00> : vector<256xf32>
    %13 = vector.multi_reduction <add>, %12, %cst_3 [1] : vector<256x128xf32> to vector<256xf32>
    %14 = vector.shape_cast %13 : vector<256xf32> to vector<256x1xf32>
    %cst_4 = arith.constant 3.125000e-02 : f32
    %15 = vector.broadcast %cst_4 : f32 to vector<256x1xf32>
    %16 = arith.mulf %14, %15 : vector<256x1xf32>
    %cst_5 = arith.constant 9.99999974E-6 : f32
    %17 = vector.broadcast %cst_5 : f32 to vector<256x1xf32>
    %18 = arith.addf %16, %17 : vector<256x1xf32>
    %19 = math.rsqrt %18 : vector<256x1xf32>
    %20 = vector.broadcast %19 : vector<256x1xf32> to vector<256x128xf32>
    %21 = arith.mulf %11, %20 : vector<256x128xf32>
    %c0_6 = arith.constant 0 : index
    %c0_7 = arith.constant 0 : index
    %22 = vector.load %arg2[%c0_6, %c0_7] : memref<1x128xf32, #tpu.memory_space<vmem>>, vector<1x128xf32>
    %23 = vector.broadcast %22 : vector<1x128xf32> to vector<256x128xf32>
    %24 = arith.mulf %21, %23 : vector<256x128xf32>
    %c0_8 = arith.constant 0 : index
    %c0_9 = arith.constant 0 : index
    %25 = vector.load %arg3[%c0_8, %c0_9] : memref<1x128xf32, #tpu.memory_space<vmem>>, vector<1x128xf32>
    %26 = vector.broadcast %25 : vector<1x128xf32> to vector<256x128xf32>
    %27 = arith.addf %24, %26 : vector<256x128xf32>
    %28 = arith.truncf %27 : vector<256x128xf32> to vector<256x128xbf16>
    %c0_10 = arith.constant 0 : index
    %c0_11 = arith.constant 0 : index
    %29 = vector.load %arg4[%c0_10, %c0_11] : memref<128x128xbf16, #tpu.memory_space<vmem>>, vector<128x128xbf16>
    %cst_12 = arith.constant dense<0.000000e+00> : vector<256x128xf32>
    %30 = tpu.matmul %28, %29, %cst_12 {dimension_numbers = #tpu.dot_dimension_numbers<[1], [0], [0], [1], [0, 0, 1, 1], [], []>} : vector<256x128xbf16>, vector<128x128xbf16>, vector<256x128xf32> -> vector<256x128xf32>
    %c0_13 = arith.constant 0 : index
    %c0_14 = arith.constant 0 : index
    %31 = vector.load %arg5[%c0_13, %c0_14] : memref<1x128xf32, #tpu.memory_space<vmem>>, vector<1x128xf32>
    %32 = vector.broadcast %31 : vector<1x128xf32> to vector<256x128xf32>
    %33 = arith.addf %30, %32 : vector<256x128xf32>
    %c0_15 = arith.constant 0 : index
    %c0_16 = arith.constant 0 : index
    %34 = vector.load %arg6[%c0_15, %c0_16] : memref<256x128xf32, #tpu.memory_space<vmem>>, vector<256x128xf32>
    tpu.vector_store %arg6[%c0_15, %c0_16], %33 {strides = array<i32>} : memref<256x128xf32, #tpu.memory_space<vmem>>, vector<256x128xf32>,
    return
  }
  func.func @transform_0(%arg0: i32) -> (i32, i32) {
    %c0_i32 = arith.constant 0 : i32
    %c0_i32_0 = arith.constant 0 : i32
    return %arg0, %c0_i32 : i32, i32
  }
  func.func @transform_1(%arg0: i32) -> (i32, i32) {
    %c0_i32 = arith.constant 0 : i32
    %c0_i32_0 = arith.constant 0 : i32
    %c0_i32_1 = arith.constant 0 : i32
    return %c0_i32, %c0_i32_0 : i32, i32
  }
  func.func @transform_2(%arg0: i32) -> (i32, i32) {
    %c0_i32 = arith.constant 0 : i32
    %c0_i32_0 = arith.constant 0 : i32
    %c0_i32_1 = arith.constant 0 : i32
    return %c0_i32, %c0_i32_0 : i32, i32
  }
  func.func @transform_3(%arg0: i32) -> (i32, i32) {
    %c0_i32 = arith.constant 0 : i32
    %c0_i32_0 = arith.constant 0 : i32
    %c0_i32_1 = arith.constant 0 : i32
    return %c0_i32, %c0_i32_0 : i32, i32
  }
  func.func @transform_4(%arg0: i32) -> (i32, i32) {
    %c0_i32 = arith.constant 0 : i32
    %c0_i32_0 = arith.constant 0 : i32
    %c0_i32_1 = arith.constant 0 : i32
    return %c0_i32, %c0_i32_0 : i32, i32
  }
  func.func @transform_5(%arg0: i32) -> (i32, i32) {
    %c0_i32 = arith.constant 0 : i32
    %c0_i32_0 = arith.constant 0 : i32
    return %arg0, %c0_i32 : i32, i32
  }
}

</mosaic_0001>

<bundles_post_ra>
// kernel: tpu_custom_call.1
= control target key start
LH: loop header
LB: loop body
LE: loop exit
PB: predicated region body
PF: predicated region fallthrough
CT: control target
= control target key end

     0   :  { %10 = vsyncpa [#allocation3], 0  ;;  %s2478_s0 = inlined_call_operand.hbm [shape: f32[256,128], index: 0, kind: input, shape index: {}]   ;;  %s2479_s1 = inlined_call_operand.hbm [shape: f32[1,128], index: 1, kind: input, shape index: {}]   ;;  %s2480_s2 = inlined_call_operand.vmem [shape: f32[1,128], index: 2, kind: input, shape index: {}]   ;;  %s2481_s3 = inlined_call_operand.hbm [shape: bf16[128,128], index: 3, kind: input, shape index: {}]   ;;  %s2482_s4 = inlined_call_operand.vmem [shape: f32[1,128], index: 4, kind: input, shape index: {}]   ;;  %s2483_s5 = inlined_call_operand.hbm [shape: f32[256,128], index: 5, kind: output, shape index: {}]  }
   0x1   :  { %11 = vsyncpa [#allocation6], 0  ;;  %s31_s20 = sshll.u32 %s2479_s1, 4  ;;  %s32_s20 = int_to_ptr.hbm [resolvable:$true] %s31_s20 }
   0x2   :  { %12 = vsyncpa [#allocation4], 0  ;;  %s1311_s21 = smov [#allocation5]   ;;  %s17_s25 = sshll.u32 %s2478_s0, 4  ;;  %s18_s25 = int_to_ptr.hbm [resolvable:$true] %s17_s25 }
   0x3   :  { %s33_s22 = sshll.u32 %s1311_s21, 4  ;;  %s1312_s26 = smov [#allocation2]   ;;  %s34_s22 = int_to_ptr.vmem [resolvable:$true] %s33_s22 }
   0x4   :  { %36 = dma.hbm_to_vmem [thread:$0]  %s32_s20, 16, %s34_s22, [#allocation6]  }
   0x5   :  { %s19_s27 = sshll.u32 %s1312_s26, 4  ;;  %s1313_s28 = smov 128   ;;  %s20_s27 = int_to_ptr.vmem [resolvable:$true] %s19_s27 }
   0x6   :  { %s1314_s29 = smov 8   ;;  %s43_s6 = sshll.u32 %s2481_s3, 4  ;;  %s44_s6 = int_to_ptr.hbm [resolvable:$true] %s43_s6 }
   0x7   :  { %25 = dma.hbm_to_vmem [thread:$0]  %s18_s25, 4096, %s20_s27, [#allocation3], %s1313_s28, %s1313_s28, %s1314_s29  }
   0x8   :  { %s1315_s7 = smov [#allocation7]   ;;  %s1316_s0 = smov 64  }
   0x9   :  { %s45_s8 = sshll.u32 %s1315_s7, 4  ;;  %s1317_s9 = smov 4   ;;  %s46_s8 = int_to_ptr.vmem [resolvable:$true] %s45_s8 }
   0xa   :  { %51 = dma.hbm_to_vmem [thread:$0]  %s44_s6, 1024, %s46_s8, [#allocation6], %s1316_s0, %s1316_s0, %s1317_s9  }
   0xb   :  { %1305 = dma.done.wait [#allocation3], 4096  }
   0xc   :  { %1306 = vsyncadd [#allocation3], 4294963200 }
   0xd   :  { %1307 = dma.done.wait [#allocation6], 1040  }
   0xe   :  { %1308 = vsyncadd [#allocation6], 4294966256  ;;  %v1361_v0 = vld [vmem:[#allocation2 + $0xc0] sm:$0xff]  ;;  %v1370_v3 = vld [vmem:[#allocation2 + $0xc8] sm:$0xff]  ;;  %v226_v32 = vlaneseq  ;;  %s1056_s15 = sshll.u32 %s2483_s5, 4  ;;  %s1057_s15 = int_to_ptr.hbm [resolvable:$true] %s1056_s15 }
   0xf   :  { %v1363_v1 = vld [vmem:[#allocation2 + $0x80] sm:$0xff]  ;;  %146 = vadd.xlane.f32.xlu1 %v1361_v0  ;;  %v1372_v4 = vld [vmem:[#allocation2 + $0x88] sm:$0xff]  ;;  %v1383_v8 = vld [vmem:[#allocation2 + $0x90] sm:$0xff] }
  0x10   :  { %v1365_v2 = vld [vmem:[#allocation2] sm:$0xff]  ;;  %130 = vadd.xlane.f32.xlu0 %v1363_v1  ;;  %v1374_v5 = vld [vmem:[#allocation2 + $0x8] sm:$0xff]  ;;  %v1388_v9 = vld [vmem:[#allocation2 + $0xd0] sm:$0xff]  ;;  %v1457_v33 = vand.u32 127, %v226_v32 }
  0x11   :  { %98 = vadd.xlane.f32.xlu2 %v1365_v2  ;;  %v1379_v6 = vld [vmem:[#allocation2 + $0x48] sm:$0xff]  ;;  %v1381_v7 = vld [vmem:[#allocation2 + $0x40] sm:$0xff]  ;;  %v1390_v10 = vld [vmem:[#allocation2 + $0x98] sm:$0xff] }
  0x12   :  { %v1392_v11 = vld [vmem:[#allocation2 + $0xd8] sm:$0xff]  ;;  %v1399_v13 = vld [vmem:[#allocation2 + $0x10] sm:$0xff]  ;;  %v1406_v15 = vld [vmem:[#allocation2 + $0xa0] sm:$0xff]  ;;  %vm228_vm0 = vcmp.lt.s32.totalorder %v1457_v33, 32 }
  0x13   :  { %v1397_v12 = vld [vmem:[#allocation2 + $0x18] sm:$0xff]  ;;  %v1401_v14 = vld [vmem:[#allocation2 + $0x50] sm:$0xff]  ;;  %v1410_v17 = vld [vmem:[#allocation2 + $0xa8] sm:$0xff] }
  0x14   :  { %v1408_v16 = vld [vmem:[#allocation2 + $0x58] sm:$0xff]  ;;  %v1415_v18 = vld [vmem:[#allocation2 + $0xe8] sm:$0xff]  ;;  %v1417_v19 = vld [vmem:[#allocation2 + $0xe0] sm:$0xff] }
  0x15   :  { %v1419_v20 = vld [vmem:[#allocation2 + $0x20] sm:$0xff]  ;;  %v1426_v22 = vld [vmem:[#allocation2 + $0x28] sm:$0xff]  ;;  %v1433_v24 = vld [vmem:[#allocation2 + $0xb0] sm:$0xff] }
  0x16   :  { %v1424_v21 = vld [vmem:[#allocation2 + $0x60] sm:$0xff]  ;;  %v1428_v23 = vld [vmem:[#allocation2 + $0x68] sm:$0xff]  ;;  %v1435_v25 = vld [vmem:[#allocation2 + $0xf0] sm:$0xff] }
  0x17   :  { %148 = vadd.xlane.f32.xlu1 %v1370_v3  ;;  %v1437_v26 = vld [vmem:[#allocation2 + $0xb8] sm:$0xff]  ;;  %v1444_v28 = vld [vmem:[#allocation2 + $0x30] sm:$0xff] }
  0x18   :  { %132 = vadd.xlane.f32.xlu0 %v1372_v4  ;;  %v1442_v27 = vld [vmem:[#allocation2 + $0xf8] sm:$0xff]  ;;  %v1446_v29 = vld [vmem:[#allocation2 + $0x70] sm:$0xff] }
  0x19   :  { %100 = vadd.xlane.f32.xlu2 %v1374_v5  ;;  %v1451_v30 = vld [vmem:[#allocation2 + $0x38] sm:$0xff]  ;;  %v1107_v33 = vld [vmem:[#allocation7 + $0x28] sm:$0xff] }
  0x1a   :  { %v1453_v31 = vld [vmem:[#allocation2 + $0x78] sm:$0xff] }
  0x1f   :  { %116 = vadd.xlane.f32.xlu1 %v1379_v6 }
  0x20   :  { %114 = vadd.xlane.f32.xlu0 %v1381_v7 }
  0x21   :  { %134 = vadd.xlane.f32.xlu2 %v1383_v8 }
  0x27   :  { %150 = vadd.xlane.f32.xlu1 %v1388_v9 }
  0x28   :  { %136 = vadd.xlane.f32.xlu0 %v1390_v10 }
  0x29   :  { %152 = vadd.xlane.f32.xlu2 %v1392_v11 }
  0x2f   :  { %104 = vadd.xlane.f32.xlu1 %v1397_v12 }
  0x30   :  { %102 = vadd.xlane.f32.xlu0 %v1399_v13 }
  0x31   :  { %118 = vadd.xlane.f32.xlu2 %v1401_v14 }
  0x37   :  { %138 = vadd.xlane.f32.xlu1 %v1406_v15 }
  0x38   :  { %120 = vadd.xlane.f32.xlu0 %v1408_v16 }
  0x39   :  { %140 = vadd.xlane.f32.xlu2 %v1410_v17 }
  0x3f   :  { %156 = vadd.xlane.f32.xlu1 %v1415_v18 }
  0x40   :  { %154 = vadd.xlane.f32.xlu0 %v1417_v19 }
  0x41   :  { %106 = vadd.xlane.f32.xlu2 %v1419_v20 }
  0x47   :  { %122 = vadd.xlane.f32.xlu1 %v1424_v21 }
  0x48   :  { %108 = vadd.xlane.f32.xlu0 %v1426_v22 }
  0x49   :  { %124 = vadd.xlane.f32.xlu2 %v1428_v23 }
  0x4f   :  { %142 = vadd.xlane.f32.xlu1 %v1433_v24 }
  0x50   :  { %158 = vadd.xlane.f32.xlu0 %v1435_v25 }
  0x51   :  { %144 = vadd.xlane.f32.xlu2 %v1437_v26 }
  0x57   :  { %160 = vadd.xlane.f32.xlu1 %v1442_v27 }
  0x58   :  { %110 = vadd.xlane.f32.xlu0 %v1444_v28 }
  0x59   :  { %126 = vadd.xlane.f32.xlu2 %v1446_v29 }
  0x5f   :  { %112 = vadd.xlane.f32.xlu1 %v1451_v30 }
  0x60   :  { %128 = vadd.xlane.f32.xlu0 %v1453_v31 }
  0x82   :  { %v147_v34 = vpop.xlane.xlu1 %146 }
  0x83   :  { %v131_v35 = vpop.xlane.xlu0 %130  ;;  %v186_v36 = vmul.f32 0.03125, %v147_v34 }
  0x84   :  { %v178_v37 = vmul.f32 0.03125, %v131_v35  ;;  %v99_v38 = vpop.xlane.xlu2 %98 }
  0x85   :  { %v218_v39 = vsub.f32 %v1361_v0, %v186_v36  ;;  %v162_v41 = vmul.f32 0.03125, %v99_v38 }
  0x86   :  { %v210_v40 = vsub.f32 %v1363_v1, %v178_v37 }
  0x87   :  { %v1468_v43 = vsel %vm228_vm0, %v218_v39, 0.0  ;;  %v194_v46 = vsub.f32 %v1365_v2, %v162_v41 }
  0x88   :  { %v1464_v42 = vsel %vm228_vm0, %v210_v40, 0.0  ;;  %v285_v45 = vmul.f32 %v1468_v43, %v1468_v43 }
  0x89   :  { %v277_v44 = vmul.f32 %v1464_v42, %v1464_v42  ;;  %v1479_v55 = vsel %vm228_vm0, %v194_v46, 0.0 }
  0x8a   :  { %v149_v47 = vpop.xlane.xlu1 %148  ;;  %341 = vadd.xlane.f32.xlu2 %v285_v45  ;;  %v261_v61 = vmul.f32 %v1479_v55, %v1479_v55 }
  0x8b   :  { %v133_v48 = vpop.xlane.xlu0 %132  ;;  %325 = vadd.xlane.f32.xlu0 %v277_v44  ;;  %v187_v49 = vmul.f32 0.03125, %v149_v47 }
  0x8c   :  { %v179_v50 = vmul.f32 0.03125, %v133_v48  ;;  %v101_v51 = vpop.xlane.xlu2 %100 }
  0x8d   :  { %v219_v52 = vsub.f32 %v1370_v3, %v187_v49  ;;  %v163_v54 = vmul.f32 0.03125, %v101_v51 }
  0x8e   :  { %v211_v53 = vsub.f32 %v1372_v4, %v179_v50 }
  0x8f   :  { %v1487_v57 = vsel %vm228_vm0, %v219_v52, 0.0  ;;  %v195_v60 = vsub.f32 %v1374_v5, %v163_v54 }
  0x90   :  { %v1483_v56 = vsel %vm228_vm0, %v211_v53, 0.0  ;;  %v286_v59 = vmul.f32 %v1487_v57, %v1487_v57 }
  0x91   :  { %v278_v58 = vmul.f32 %v1483_v56, %v1483_v56  ;;  %v1500_v34 = vsel %vm228_vm0, %v195_v60, 0.0 }
  0x92   :  { %v117_v62 = vpop.xlane.xlu1 %116  ;;  %293 = vadd.xlane.f32.xlu2 %v261_v61 }
  0x93   :  { %v115_v63 = vpop.xlane.xlu0 %114  ;;  %327 = vadd.xlane.f32.xlu1 %v278_v58  ;;  %343 = vadd.xlane.f32.xlu0 %v286_v59  ;;  %v171_v0 = vmul.f32 0.03125, %v117_v62 }
  0x94   :  { %v170_v1 = vmul.f32 0.03125, %v115_v63  ;;  %v135_v2 = vpop.xlane.xlu2 %134 }
  0x95   :  { %v203_v3 = vsub.f32 %v1379_v6, %v171_v0  ;;  %v180_v32 = vmul.f32 0.03125, %v135_v2 }
  0x96   :  { %v202_v4 = vsub.f32 %v1381_v7, %v170_v1  ;;  %v262_v7 = vmul.f32 %v1500_v34, %v1500_v34 }
  0x97   :  { %v1508_v35 = vsel %vm228_vm0, %v203_v3, 0.0  ;;  %v212_v37 = vsub.f32 %v1383_v8, %v180_v32 }
  0x98   :  { %v1504_v5 = vsel %vm228_vm0, %v202_v4, 0.0  ;;  %v270_v6 = vmul.f32 %v1508_v35, %v1508_v35 }
  0x99   :  { %v269_v36 = vmul.f32 %v1504_v5, %v1504_v5  ;;  %v1521_v48 = vsel %vm228_vm0, %v212_v37, 0.0 }
  0x9a   :  { %v151_v38 = vpop.xlane.xlu1 %150  ;;  %311 = vadd.xlane.f32.xlu2 %v270_v6 }
  0x9b   :  { %v137_v39 = vpop.xlane.xlu0 %136  ;;  %309 = vadd.xlane.f32.xlu1 %v269_v36  ;;  %295 = vadd.xlane.f32.xlu0 %v262_v7  ;;  %v188_v40 = vmul.f32 0.03125, %v151_v38 }
  0x9c   :  { %v181_v41 = vmul.f32 0.03125, %v137_v39  ;;  %v153_v44 = vpop.xlane.xlu2 %152 }
  0x9d   :  { %v220_v45 = vsub.f32 %v1388_v9, %v188_v40  ;;  %v189_v47 = vmul.f32 0.03125, %v153_v44 }
  0x9e   :  { %v213_v46 = vsub.f32 %v1390_v10, %v181_v41  ;;  %v279_v10 = vmul.f32 %v1521_v48, %v1521_v48 }
  0x9f   :  { %v1529_v49 = vsel %vm228_vm0, %v220_v45, 0.0  ;;  %v221_v51 = vsub.f32 %v1392_v11, %v189_v47 }
  0xa0   :  { %v1525_v8 = vsel %vm228_vm0, %v213_v46, 0.0  ;;  %v287_v9 = vmul.f32 %v1529_v49, %v1529_v49 }
  0xa1   :  { %v280_v50 = vmul.f32 %v1525_v8, %v1525_v8  ;;  %v1542_v63 = vsel %vm228_vm0, %v221_v51, 0.0 }
  0xa2   :  { %v105_v52 = vpop.xlane.xlu1 %104 }
  0xa3   :  { %v103_v53 = vpop.xlane.xlu0 %102  ;;  %345 = vadd.xlane.f32.xlu0 %v287_v9  ;;  %329 = vadd.xlane.f32.xlu1 %v279_v10  ;;  %v165_v54 = vmul.f32 0.03125, %v105_v52 }
  0xa4   :  { %v164_v58 = vmul.f32 0.03125, %v103_v53  ;;  %331 = vadd.xlane.f32.xlu2 %v280_v50  ;;  %v119_v59 = vpop.xlane.xlu2 %118 }
  0xa5   :  { %v197_v60 = vsub.f32 %v1397_v12, %v165_v54  ;;  %v172_v62 = vmul.f32 0.03125, %v119_v59 }
  0xa6   :  { %v196_v61 = vsub.f32 %v1399_v13, %v164_v58  ;;  %v288_v13 = vmul.f32 %v1542_v63, %v1542_v63 }
  0xa7   :  { %v1550_v0 = vsel %vm228_vm0, %v197_v60, 0.0  ;;  %v204_v2 = vsub.f32 %v1401_v14, %v172_v62 }
  0xa8   :  { %v1546_v11 = vsel %vm228_vm0, %v196_v61, 0.0  ;;  %v264_v12 = vmul.f32 %v1550_v0, %v1550_v0 }
  0xa9   :  { %v263_v1 = vmul.f32 %v1546_v11, %v1546_v11  ;;  %v1563_v39 = vsel %vm228_vm0, %v204_v2, 0.0 }
  0xaa   :  { %v139_v3 = vpop.xlane.xlu1 %138 }
  0xab   :  { %v121_v4 = vpop.xlane.xlu0 %120  ;;  %299 = vadd.xlane.f32.xlu0 %v264_v12  ;;  %347 = vadd.xlane.f32.xlu1 %v288_v13  ;;  %v182_v32 = vmul.f32 0.03125, %v139_v3 }
  0xac   :  { %v173_v36 = vmul.f32 0.03125, %v121_v4  ;;  %297 = vadd.xlane.f32.xlu2 %v263_v1  ;;  %v141_v6 = vpop.xlane.xlu2 %140 }
  0xad   :  { %v214_v7 = vsub.f32 %v1406_v15, %v182_v32  ;;  %v183_v38 = vmul.f32 0.03125, %v141_v6 }
  0xae   :  { %v205_v37 = vsub.f32 %v1408_v16, %v173_v36  ;;  %v271_v16 = vmul.f32 %v1563_v39, %v1563_v39 }
  0xaf   :  { %v1571_v40 = vsel %vm228_vm0, %v214_v7, 0.0  ;;  %v215_v44 = vsub.f32 %v1410_v17, %v183_v38 }
  0xb0   :  { %v1567_v14 = vsel %vm228_vm0, %v205_v37, 0.0  ;;  %v281_v15 = vmul.f32 %v1571_v40, %v1571_v40 }
  0xb1   :  { %v272_v41 = vmul.f32 %v1567_v14, %v1567_v14  ;;  %v1584_v53 = vsel %vm228_vm0, %v215_v44, 0.0 }
  0xb2   :  { %v157_v45 = vpop.xlane.xlu1 %156 }
  0xb3   :  { %v155_v46 = vpop.xlane.xlu0 %154  ;;  %333 = vadd.xlane.f32.xlu0 %v281_v15  ;;  %313 = vadd.xlane.f32.xlu1 %v271_v16  ;;  %v191_v47 = vmul.f32 0.03125, %v157_v45 }
  0xb4   :  { %v190_v50 = vmul.f32 0.03125, %v155_v46  ;;  %315 = vadd.xlane.f32.xlu2 %v272_v41  ;;  %v107_v9 = vpop.xlane.xlu2 %106 }
  0xb5   :  { %v223_v10 = vsub.f32 %v1415_v18, %v191_v47  ;;  %v166_v52 = vmul.f32 0.03125, %v107_v9 }
  0xb6   :  { %v222_v51 = vsub.f32 %v1417_v19, %v190_v50  ;;  %v282_v19 = vmul.f32 %v1584_v53, %v1584_v53 }
  0xb7   :  { %v1592_v54 = vsel %vm228_vm0, %v223_v10, 0.0  ;;  %v198_v59 = vsub.f32 %v1419_v20, %v166_v52 }
  0xb8   :  { %v1588_v17 = vsel %vm228_vm0, %v222_v51, 0.0  ;;  %v290_v18 = vmul.f32 %v1592_v54, %v1592_v54 }
  0xb9   :  { %v289_v58 = vmul.f32 %v1588_v17, %v1588_v17  ;;  %v1605_v4 = vsel %vm228_vm0, %v198_v59, 0.0 }
  0xba   :  { %v123_v60 = vpop.xlane.xlu1 %122 }
  0xbb   :  { %v109_v61 = vpop.xlane.xlu0 %108  ;;  %351 = vadd.xlane.f32.xlu0 %v290_v18  ;;  %335 = vadd.xlane.f32.xlu1 %v282_v19  ;;  %v174_v62 = vmul.f32 0.03125, %v123_v60 }
  0xbc   :  { %v167_v1 = vmul.f32 0.03125, %v109_v61  ;;  %349 = vadd.xlane.f32.xlu2 %v289_v58  ;;  %v125_v12 = vpop.xlane.xlu2 %124 }
  0xbd   :  { %v206_v13 = vsub.f32 %v1424_v21, %v174_v62  ;;  %v175_v3 = vmul.f32 0.03125, %v125_v12 }
  0xbe   :  { %v199_v2 = vsub.f32 %v1426_v22, %v167_v1  ;;  %v265_v22 = vmul.f32 %v1605_v4, %v1605_v4 }
  0xbf   :  { %v1613_v32 = vsel %vm228_vm0, %v206_v13, 0.0  ;;  %v207_v6 = vsub.f32 %v1428_v23, %v175_v3 }
  0xc0   :  { %v1609_v20 = vsel %vm228_vm0, %v199_v2, 0.0  ;;  %v273_v21 = vmul.f32 %v1613_v32, %v1613_v32 }
  0xc1   :  { %v266_v36 = vmul.f32 %v1609_v20, %v1609_v20  ;;  %v1625_v45 = vsel %vm228_vm0, %v207_v6, 0.0 }
  0xc2   :  { %v143_v7 = vpop.xlane.xlu1 %142  ;;  %2493 = vst [vmem:[#allocation12_spill] sm:$0xff] %v1625_v45  ;;  %v274_v50 = vmul.f32 %v1625_v45, %v1625_v45 }
  0xc3   :  { %v159_v37 = vpop.xlane.xlu0 %158  ;;  %317 = vadd.xlane.f32.xlu0 %v273_v21  ;;  %301 = vadd.xlane.f32.xlu1 %v265_v22  ;;  %v184_v38 = vmul.f32 0.03125, %v143_v7 }
  0xc4   :  { %303 = vadd.xlane.f32.xlu2 %v266_v36  ;;  %v145_v41 = vpop.xlane.xlu2 %144  ;;  %v192_v44 = vmul.f32 0.03125, %v159_v37 }
  0xc5   :  { %v185_v15 = vmul.f32 0.03125, %v145_v41  ;;  %v216_v16 = vsub.f32 %v1433_v24, %v184_v38 }
  0xc6   :  { %v224_v9 = vsub.f32 %v1435_v25, %v192_v44  ;;  %v1104_v44 = vld [vmem:[#allocation7 + $0x10] sm:$0xff] }
  0xc7   :  { %v217_v46 = vsub.f32 %v1437_v26, %v185_v15  ;;  %v1630_v23 = vsel %vm228_vm0, %v216_v16, 0.0  ;;  %v1106_v15 = vld [vmem:[#allocation7 + $0x20] sm:$0xff]  ;;  %v1105_v16 = vld [vmem:[#allocation7 + $0x18] sm:$0xff] }
  0xc8   :  { %2494 = vst [vmem:[#allocation13_spill] sm:$0xff] %v1630_v23  ;;  %v283_v47 = vmul.f32 %v1630_v23, %v1630_v23  ;;  %v1647_v61 = vsel %vm228_vm0, %v224_v9, 0.0 }
  0xc9   :  { %v1638_v24 = vsel %vm228_vm0, %v217_v46, 0.0  ;;  %2496 = vst [vmem:[#allocation15_spill] sm:$0xff] %v1647_v61 }
  0xca   :  { %2495 = vst [vmem:[#allocation14_spill] sm:$0xff] %v1638_v24  ;;  %v284_v10 = vmul.f32 %v1638_v24, %v1638_v24  ;;  %v161_v26 = vpop.xlane.xlu1 %160 }
  0xcb   :  { %v111_v51 = vpop.xlane.xlu0 %110  ;;  %319 = vadd.xlane.f32.xlu1 %v274_v50  ;;  %v193_v52 = vmul.f32 0.03125, %v161_v26 }
  0xcc   :  { %v168_v58 = vmul.f32 0.03125, %v111_v51  ;;  %337 = vadd.xlane.f32.xlu2 %v283_v47  ;;  %339 = vadd.xlane.f32.xlu0 %v284_v10  ;;  %v127_v18 = vpop.xlane.xlu2 %126  ;;  %v1103_v10 = vld [vmem:[#allocation7 + $0x8] sm:$0xff] }
  0xcd   :  { %v176_v19 = vmul.f32 0.03125, %v127_v18  ;;  %v225_v59 = vsub.f32 %v1442_v27, %v193_v52  ;;  %v291_v27 = vmul.f32 %v1647_v61, %v1647_v61  ;;  %v1102_v52 = vld [vmem:[#allocation7] sm:$0xff] }
  0xce   :  { %v200_v60 = vsub.f32 %v1444_v28, %v168_v58 }
  0xcf   :  { %v1651_v25 = vsel %vm228_vm0, %v225_v59, 0.0  ;;  %v208_v12 = vsub.f32 %v1446_v29, %v176_v19 }
  0xd0   :  { %2497 = vst [vmem:[#allocation16_spill] sm:$0xff] %v1651_v25  ;;  %v1655_v62 = vsel %vm228_vm0, %v200_v60, 0.0  ;;  %v292_v1 = vmul.f32 %v1651_v25, %v1651_v25 }
  0xd1   :  { %2498 = vst [vmem:[#allocation17_spill] sm:$0xff] %v1655_v62  ;;  %v267_v28 = vmul.f32 %v1655_v62, %v1655_v62  ;;  %v1666_v21 = vsel %vm228_vm0, %v208_v12, 0.0 }
  0xd2   :  { %v113_v13 = vpop.xlane.xlu1 %112  ;;  %2499 = vst [vmem:[#allocation18_spill] sm:$0xff] %v1666_v21  ;;  %v275_v37 = vmul.f32 %v1666_v21, %v1666_v21 }
  0xd3   :  { %v129_v2 = vpop.xlane.xlu0 %128  ;;  %353 = vadd.xlane.f32.xlu1 %v291_v27  ;;  %v169_v3 = vmul.f32 0.03125, %v113_v13 }
  0xd4   :  { %v177_v36 = vmul.f32 0.03125, %v129_v2  ;;  %355 = vadd.xlane.f32.xlu2 %v292_v1  ;;  %305 = vadd.xlane.f32.xlu0 %v267_v28 }
  0xd5   :  { %v201_v22 = vsub.f32 %v1451_v30, %v169_v3  ;;  %v1109_v30 = vld [vmem:[#allocation7 + $0x38] sm:$0xff] }
  0xd6   :  { %v209_v6 = vsub.f32 %v1453_v31, %v177_v36  ;;  %1111 = vmatpush.bf16.msra.mxu2 %v1109_v30  ;;  %1112 = vmatpush.bf16.msra.mxu3 %v1109_v30  ;;  %v1108_v31 = vld [vmem:[#allocation7 + $0x30] sm:$0xff] }
  0xd7   :  { %v1672_v7 = vsel %vm228_vm0, %v201_v22, 0.0  ;;  %929 = vmatpush.bf16.msra.mxu0 %v1109_v30  ;;  %1110 = vmatpush.bf16.msra.mxu1 %v1109_v30 }
  0xd8   :  { %2500 = vst [vmem:[#allocation19_spill] sm:$0xff] %v1672_v7  ;;  %v1676_v29 = vsel %vm228_vm0, %v209_v6, 0.0  ;;  %v268_v38 = vmul.f32 %v1672_v7, %v1672_v7 }
  0xd9   :  { %2501 = vst [vmem:[#allocation20_spill] sm:$0xff] %v1676_v29  ;;  %v276_v41 = vmul.f32 %v1676_v29, %v1676_v29 }
  0xda   :  { %1114 = vmatpush.bf16.msra.mxu2 %v1108_v31  ;;  %1115 = vmatpush.bf16.msra.mxu3 %v1108_v31 }
  0xdb   :  { %307 = vadd.xlane.f32.xlu1 %v268_v38  ;;  %930 = vmatpush.bf16.msra.mxu0 %v1108_v31 }
  0xdc   :  { %323 = vadd.xlane.f32.xlu0 %v276_v41  ;;  %321 = vadd.xlane.f32.xlu2 %v275_v37 }
  0xdd   :  { %1113 = vmatpush.bf16.msra.mxu1 %v1108_v31 }
  0xde   :  { %1117 = vmatpush.bf16.msra.mxu2 %v1107_v33  ;;  %1118 = vmatpush.bf16.msra.mxu3 %v1107_v33 }
  0xdf   :  { %931 = vmatpush.bf16.msra.mxu0 %v1107_v33 }
  0xe1   :  { %1116 = vmatpush.bf16.msra.mxu1 %v1107_v33 }
  0xe2   :  { %1120 = vmatpush.bf16.msra.mxu2 %v1106_v15  ;;  %1121 = vmatpush.bf16.msra.mxu3 %v1106_v15 }
  0xe3   :  { %932 = vmatpush.bf16.msra.mxu0 %v1106_v15 }
  0xe5   :  { %1119 = vmatpush.bf16.msra.mxu1 %v1106_v15 }
  0xe6   :  { %1123 = vmatpush.bf16.msra.mxu2 %v1105_v16  ;;  %1124 = vmatpush.bf16.msra.mxu3 %v1105_v16 }
  0xe7   :  { %933 = vmatpush.bf16.msra.mxu0 %v1105_v16 }
  0xe9   :  { %1122 = vmatpush.bf16.msra.mxu1 %v1105_v16 }
  0xea   :  { %1126 = vmatpush.bf16.msra.mxu2 %v1104_v44  ;;  %1127 = vmatpush.bf16.msra.mxu3 %v1104_v44 }
  0xeb   :  { %934 = vmatpush.bf16.msra.mxu0 %v1104_v44 }
  0xed   :  { %1125 = vmatpush.bf16.msra.mxu1 %v1104_v44 }
  0xee   :  { %1129 = vmatpush.bf16.msra.mxu2 %v1103_v10  ;;  %1130 = vmatpush.bf16.msra.mxu3 %v1103_v10 }
  0xef   :  { %935 = vmatpush.bf16.msra.mxu0 %v1103_v10 }
  0xf1   :  { %1128 = vmatpush.bf16.msra.mxu1 %v1103_v10 }
  0xf2   :  { %1132 = vmatpush.bf16.msra.mxu2 %v1102_v52  ;;  %1133 = vmatpush.bf16.msra.mxu3 %v1102_v52 }
  0xf3   :  { %936 = vmatpush.bf16.msra.mxu0 %v1102_v52 }
  0xf5   :  { %1131 = vmatpush.bf16.msra.mxu1 %v1102_v52 }
  0xfd   :  { %v342_v47 = vpop.xlane.xlu2 %341 }
  0xfe   :  { %v326_v46 = vpop.xlane.xlu0 %325  ;;  %v381_v9 = vmul.f32 0.03125, %v342_v47 }
  0xff   :  { %v373_v50 = vmul.f32 0.03125, %v326_v46 }
 0x100   :  { %v1686_v51 = vadd.f32 1e-05, %v381_v9 }
 0x101   :  { %v1684_v26 = vadd.f32 1e-05, %v373_v50 }
 0x102   :  { %vm667_vm9 = vweird.f32 %v1686_v51 }
 0x103   :  { %1145 = vrsqrt.f32 %v1684_v26  ;;  %vm587_vm2 = vweird.f32 %v1684_v26 }
 0x104   :  { %1147 = vrsqrt.f32 %v1686_v51 }
 0x105   :  { %v294_v60 = vpop.xlane.xlu2 %293 }
 0x106   :  { %v328_v58 = vpop.xlane.xlu1 %327  ;;  %v344_v18 = vpop.xlane.xlu0 %343  ;;  %v357_v12 = vmul.f32 0.03125, %v294_v60 }
 0x107   :  { %v374_v19 = vmul.f32 0.03125, %v328_v58  ;;  %v382_v59 = vmul.f32 0.03125, %v344_v18 }
 0x108   :  { %v1703_v36 = vadd.f32 1e-05, %v357_v12 }
 0x109   :  { %v1690_v1 = vpop.eup %1145  ;;  %v1692_v27 = vadd.f32 1e-05, %v374_v19  ;;  %v1694_v28 = vadd.f32 1e-05, %v382_v59 }
 0x10a   :  { %v582_v13 = vmul.f32 %v1690_v1, %v1684_v26  ;;  %v1699_v2 = vpop.eup %1147  ;;  %vm588_vm1 = vweird.f32 %v1690_v1  ;;  %vm427_vm13 = vweird.f32 %v1703_v36 }
 0x10b   :  { %1149 = vrsqrt.f32 %v1692_v27  ;;  %v662_v37 = vmul.f32 %v1699_v2, %v1686_v51  ;;  %vm1743_vm3 = vmor %vm587_vm2, %vm588_vm1  ;;  %vm668_vm4 = vweird.f32 %v1699_v2  ;;  %vm597_vm6 = vweird.f32 %v1692_v27 }
 0x10c   :  { %1151 = vrsqrt.f32 %v1694_v28  ;;  %v583_v3 = vmul.f32 %v1690_v1, %v582_v13  ;;  %vm1790_vm10 = vmor %vm667_vm9, %vm668_vm4  ;;  %vm677_vm11 = vweird.f32 %v1694_v28 }
 0x10d   :  { %v312_v30 = vpop.xlane.xlu2 %311  ;;  %1153 = vrsqrt.f32 %v1703_v36  ;;  %v663_v9 = vmul.f32 %v1699_v2, %v662_v37 }
 0x10e   :  { %v310_v22 = vpop.xlane.xlu1 %309  ;;  %v296_v6 = vpop.xlane.xlu0 %295  ;;  %v366_v31 = vmul.f32 0.03125, %v312_v30  ;;  %v584_v15 = vmul.f32 0.5, %v583_v3 }
 0x10f   :  { %v365_v38 = vmul.f32 0.03125, %v310_v22  ;;  %v358_v41 = vmul.f32 0.03125, %v296_v6  ;;  %v664_v13 = vmul.f32 0.5, %v663_v9 }
 0x110   :  { %v1718_v50 = vadd.f32 1e-05, %v366_v31  ;;  %v585_v58 = vsub.f32 1.5, %v584_v15 }
 0x111   :  { %v1707_v33 = vpop.eup %1149  ;;  %v1710_v16 = vadd.f32 1e-05, %v365_v38  ;;  %v1712_v44 = vadd.f32 1e-05, %v358_v41  ;;  %v665_v9 = vsub.f32 1.5, %v664_v13 }
 0x112   :  { %v1714_v46 = vpop.eup %1151  ;;  %v592_v47 = vmul.f32 %v1707_v33, %v1692_v27  ;;  %v586_v38 = vmul.f32 %v1690_v1, %v585_v58  ;;  %vm598_vm5 = vweird.f32 %v1707_v33  ;;  %v1778_v58 = vld [vmem:[#allocation5] ss:$0 sm:$0xff]  ;;  %vm517_vm1 = vweird.f32 %v1718_v50 }
 0x113   :  { %v672_v10 = vmul.f32 %v1714_v46, %v1694_v28  ;;  %1155 = vrsqrt.f32 %v1710_v16  ;;  %v1728_v12 = vpop.eup %1153  ;;  %v666_v21 = vmul.f32 %v1699_v2, %v665_v9  ;;  %vm1765_vm7 = vmor %vm597_vm6, %vm598_vm5  ;;  %vm678_vm8 = vweird.f32 %v1714_v46  ;;  %v1810_v28 = vld [vmem:[%s2480_s2] ss:$0 sm:$0xff] }
 0x114   :  { %v593_v52 = vmul.f32 %v1707_v33, %v592_v47  ;;  %1157 = vrsqrt.f32 %v1712_v44  ;;  %v422_v15 = vmul.f32 %v1728_v12, %v1703_v36  ;;  %vm1800_vm12 = vmor %vm677_vm11, %vm678_vm8  ;;  %vm428_vm14 = vweird.f32 %v1728_v12 }
 0x115   :  { %v673_v18 = vmul.f32 %v1714_v46, %v672_v10  ;;  %1159 = vrsqrt.f32 %v1718_v50  ;;  %vm507_vm15 = vweird.f32 %v1710_v16  ;;  %vm437_vm0 = vweird.f32 %v1712_v44  ;;  %vm1868_vm4 = vmor %vm427_vm13, %vm428_vm14 }
 0x116   :  { %v594_v19 = vmul.f32 0.5, %v593_v52  ;;  %v346_v59 = vpop.xlane.xlu0 %345  ;;  %v330_v60 = vpop.xlane.xlu1 %329  ;;  %v423_v13 = vmul.f32 %v1728_v12, %v422_v15 }
 0x117   :  { %v375_v3 = vmul.f32 0.03125, %v330_v60  ;;  %v332_v22 = vpop.xlane.xlu2 %331  ;;  %v674_v37 = vmul.f32 0.5, %v673_v18  ;;  %v383_v47 = vmul.f32 0.03125, %v346_v59  ;;  %v590_v60 = vsel %vm1743_vm3, %v1690_v1, %v586_v38 }
 0x118   :  { %v595_v6 = vsub.f32 1.5, %v594_v19  ;;  %v376_v30 = vmul.f32 0.03125, %v332_v22  ;;  %v757_v9 = vmul.f32 %v590_v60, %v1464_v42 }
 0x119   :  { %v1732_v41 = vadd.f32 1e-05, %v375_v3  ;;  %v1734_v31 = vpop.eup %1155  ;;  %v675_v19 = vsub.f32 1.5, %v674_v37  ;;  %v1762_v22 = vadd.f32 1e-05, %v383_v47 }
 0x11a   :  { %v1738_v10 = vpop.eup %1157  ;;  %v596_v18 = vmul.f32 %v1707_v33, %v595_v6  ;;  %v1753_v26 = vadd.f32 1e-05, %v376_v30  ;;  %v502_v3 = vmul.f32 %v1734_v31, %v1710_v16  ;;  %v793_v60 = vmul.f32 %v1778_v58, %v757_v9 }
 0x11b   :  { %v1741_v52 = vpop.eup %1159  ;;  %v432_v59 = vmul.f32 %v1738_v10, %v1712_v44  ;;  %1161 = vrsqrt.f32 %v1732_v41  ;;  %v676_v15 = vmul.f32 %v1714_v46, %v675_v19  ;;  %vm438_vm2 = vweird.f32 %v1738_v10 }
 0x11c   :  { %v512_v1 = vmul.f32 %v1741_v52, %v1718_v50  ;;  %1163 = vrsqrt.f32 %v1753_v26  ;;  %v600_v47 = vsel %vm1765_vm7, %v1707_v33, %v596_v18  ;;  %v503_v19 = vmul.f32 %v1734_v31, %v502_v3  ;;  %vm1877_vm6 = vmor %vm437_vm0, %vm438_vm2 }
 0x11d   :  { %v433_v29 = vmul.f32 %v1738_v10, %v432_v59  ;;  %1165 = vrsqrt.f32 %v1762_v22  ;;  %v758_v51 = vmul.f32 %v600_v47, %v1483_v56  ;;  %v670_v56 = vsel %vm1790_vm10, %v1699_v2, %v666_v21 }
 0x11e   :  { %v300_v6 = vpop.xlane.xlu0 %299  ;;  %v348_v37 = vpop.xlane.xlu1 %347  ;;  %v513_v33 = vmul.f32 %v1741_v52, %v512_v1  ;;  %v680_v1 = vsel %vm1800_vm12, %v1714_v46, %v676_v15  ;;  %v829_v15 = vadd.f32 %v1810_v28, %v793_v60  ;;  %vm508_vm3 = vweird.f32 %v1734_v31 }
 0x11f   :  { %v360_v27 = vmul.f32 0.03125, %v300_v6  ;;  %v298_v38 = vpop.xlane.xlu2 %297  ;;  %v384_v62 = vmul.f32 0.03125, %v348_v37  ;;  %v424_v6 = vmul.f32 0.5, %v423_v13  ;;  %v434_v3 = vmul.f32 0.5, %v433_v29  ;;  %vm1889_vm7 = vmor %vm507_vm15, %vm508_vm3 }
 0x120   :  { %v359_v25 = vmul.f32 0.03125, %v298_v38  ;;  %v504_v38 = vmul.f32 0.5, %v503_v19  ;;  %v514_v2 = vmul.f32 0.5, %v513_v33  ;;  %v766_v9 = vmul.f32 %v680_v1, %v1487_v57 }
 0x121   :  { %v1781_v7 = vadd.f32 1e-05, %v360_v27  ;;  %v1786_v61 = vpop.eup %1161  ;;  %v1817_v37 = vadd.f32 1e-05, %v384_v62  ;;  %v425_v27 = vsub.f32 1.5, %v424_v6  ;;  %v794_v62 = vmul.f32 %v1778_v58, %v758_v51 }
 0x122   :  { %v602_v59 = vmul.f32 %v1786_v61, %v1732_v41  ;;  %v1815_v13 = vpop.eup %1163  ;;  %v1819_v30 = vadd.f32 1e-05, %v359_v25  ;;  %v765_v25 = vmul.f32 %v670_v56, %v1468_v43  ;;  %v435_v19 = vsub.f32 1.5, %v434_v3 }
 0x123   :  { %1167 = vrsqrt.f32 %v1781_v7  ;;  %v612_v21 = vmul.f32 %v1815_v13, %v1753_v26  ;;  %v1831_v47 = vpop.eup %1165  ;;  %v830_v43 = vadd.f32 %v1810_v28, %v794_v62  ;;  %v426_v18 = vmul.f32 %v1728_v12, %v425_v27 }
 0x124   :  { %1169 = vrsqrt.f32 %v1819_v30  ;;  %v603_v46 = vmul.f32 %v1786_v61, %v602_v59  ;;  %v801_v42 = vmul.f32 %v1778_v58, %v765_v25  ;;  %v505_v56 = vsub.f32 1.5, %v504_v38 }
 0x125   :  { %1171 = vrsqrt.f32 %v1817_v37  ;;  %v613_v59 = vmul.f32 %v1815_v13, %v612_v21  ;;  %v515_v57 = vsub.f32 1.5, %v514_v2  ;;  %v853_v1 = vpack.c.bf16 %v830_v43, %v829_v15 }
 0x126   :  { %v334_v29 = vpop.xlane.xlu0 %333  ;;  %v314_v33 = vpop.xlane.xlu1 %313  ;;  %v802_v3 = vmul.f32 %v1778_v58, %v766_v9  ;;  %v682_v24 = vmul.f32 %v1831_v47, %v1762_v22  ;;  %v604_v62 = vmul.f32 0.5, %v603_v46  ;;  %v436_v27 = vmul.f32 %v1738_v10, %v435_v19 }
 0x127   :  { %v316_v51 = vpop.xlane.xlu2 %315  ;;  %v377_v60 = vmul.f32 0.03125, %v334_v29  ;;  %v367_v23 = vmul.f32 0.03125, %v314_v33  ;;  %977 = vmatmul.bf16.vlgmr.msra.gmra.mxu2 %v853_v1  ;;  %v837_v38 = vadd.f32 %v1810_v28, %v801_v42  ;;  %v614_v2 = vmul.f32 0.5, %v613_v59 }
 0x128   :  { %v838_v21 = vadd.f32 %v1810_v28, %v802_v3  ;;  %v506_v19 = vmul.f32 %v1734_v31, %v505_v56  ;;  %v516_v43 = vmul.f32 %v1741_v52, %v515_v57  ;;  %vm518_vm5 = vweird.f32 %v1741_v52 }
 0x129   :  { %v1838_v6 = vpop.eup %1167  ;;  %v1860_v46 = vadd.f32 1e-05, %v377_v60  ;;  %v683_v59 = vmul.f32 %v1831_v47, %v682_v24  ;;  %v605_v36 = vsub.f32 1.5, %v604_v62  ;;  %v1883_v1 = vadd.f32 1e-05, %v367_v23  ;;  %vm1903_vm9 = vmor %vm517_vm1, %vm518_vm5 }
 0x12a   :  { %v452_v25 = vmul.f32 %v1838_v6, %v1781_v7  ;;  %v1851_v45 = vpop.eup %1169  ;;  %v857_v42 = vpack.c.bf16 %v838_v21, %v837_v38  ;;  %vm607_vm8 = vweird.f32 %v1732_v41  ;;  %v368_v57 = vmul.f32 0.03125, %v316_v51 }
 0x12b   :  { %v442_v29 = vmul.f32 %v1851_v45, %v1819_v30  ;;  %v1862_v15 = vpop.eup %1171  ;;  %v430_v24 = vsel %vm1868_vm4, %v1728_v12, %v426_v18  ;;  %v440_v23 = vsel %vm1877_vm6, %v1738_v10, %v436_v27  ;;  %v615_v3 = vsub.f32 1.5, %v614_v2 }
 0x12c   :  { %v453_v60 = vmul.f32 %v1838_v6, %v452_v25  ;;  %997 = vmatmul.bf16.vlgmr.msra.gmra.mxu3 %v857_v42  ;;  %vm617_vm10 = vweird.f32 %v1753_v26  ;;  %v692_v51 = vmul.f32 %v1862_v15, %v1817_v37  ;;  %1173 = vrsqrt.f32 %v1860_v46 }
 0x12d   :  { %v443_v44 = vmul.f32 %v1851_v45, %v442_v29  ;;  %v741_v12 = vmul.f32 %v430_v24, %v1479_v55  ;;  %v1912_v62 = vadd.f32 1e-05, %v368_v57  ;;  %v742_v10 = vmul.f32 %v440_v23, %v1500_v34 }
 0x12e   :  { %v352_v18 = vpop.xlane.xlu0 %351  ;;  %v510_v50 = vsel %vm1889_vm7, %v1734_v31, %v506_v19  ;;  %v520_v25 = vsel %vm1903_vm9, %v1741_v52, %v516_v43  ;;  %v336_v27 = vpop.xlane.xlu1 %335  ;;  %v454_v21 = vmul.f32 0.5, %v453_v60  ;;  %1175 = vrsqrt.f32 %v1883_v1 }
 0x12f   :  { %v350_v38 = vpop.xlane.xlu2 %349  ;;  %v777_v55 = vmul.f32 %v1778_v58, %v741_v12  ;;  %v749_v2 = vmul.f32 %v510_v50, %v1504_v5  ;;  %v444_v29 = vmul.f32 0.5, %v443_v44  ;;  %1177 = vrsqrt.f32 %v1912_v62 }
 0x130   :  { %v778_v34 = vmul.f32 %v1778_v58, %v742_v10  ;;  %v750_v31 = vmul.f32 %v520_v25, %v1508_v35  ;;  %v606_v9 = vmul.f32 %v1786_v61, %v605_v36  ;;  %vm608_vm11 = vweird.f32 %v1786_v61 }
 0x131   :  { %v616_v52 = vmul.f32 %v1815_v13, %v615_v3  ;;  %vm618_vm12 = vweird.f32 %v1815_v13  ;;  %vm457_vm13 = vweird.f32 %v1781_v7  ;;  %v693_v19 = vmul.f32 %v1862_v15, %v692_v51  ;;  %vm1946_vm14 = vmor %vm607_vm8, %vm608_vm11 }
 0x132   :  { %v813_v5 = vadd.f32 %v1810_v28, %v777_v55  ;;  %v814_v43 = vadd.f32 %v1810_v28, %v778_v34  ;;  %v785_v42 = vmul.f32 %v1778_v58, %v749_v2  ;;  %v1936_v33 = vpop.eup %1173  ;;  %v455_v35 = vsub.f32 1.5, %v454_v21  ;;  %vm1961_vm15 = vmor %vm617_vm10, %vm618_vm12 }
 0x133   :  { %v786_v36 = vmul.f32 %v1778_v58, %v750_v31  ;;  %v386_v60 = vmul.f32 0.03125, %v352_v18  ;;  %v378_v56 = vmul.f32 0.03125, %v336_v27  ;;  %v445_v44 = vsub.f32 1.5, %v444_v29 }
 0x134   :  { %v845_v57 = vpack.c.bf16 %v814_v43, %v813_v5  ;;  %v821_v24 = vadd.f32 %v1810_v28, %v785_v42  ;;  %v385_v23 = vmul.f32 0.03125, %v350_v38  ;;  %v1940_v16 = vpop.eup %1175  ;;  %v684_v3 = vmul.f32 0.5, %v683_v59 }
 0x135   :  { %v822_v12 = vadd.f32 %v1810_v28, %v786_v36  ;;  %v1951_v18 = vadd.f32 1e-05, %v386_v60  ;;  %v1953_v10 = vadd.f32 1e-05, %v378_v56  ;;  %v1955_v50 = vpop.eup %1177  ;;  %vm458_vm0 = vweird.f32 %v1838_v6 }
 0x136   :  { %v694_v41 = vmul.f32 0.5, %v693_v19  ;;  %vm447_vm1 = vweird.f32 %v1819_v30  ;;  %937 = vmatmul.bf16.vlgmr.msra.gmra.mxu0 %v845_v57  ;;  %v1967_v25 = vadd.f32 1e-05, %v385_v23  ;;  %vm688_vm2 = vweird.f32 %v1831_v47  ;;  %v318_v55 = vpop.xlane.xlu0 %317  ;;  %v302_v34 = vpop.xlane.xlu1 %301  ;;  %vm1992_vm5 = vmor %vm457_vm13, %vm458_vm0 }
 0x137   :  { %v622_v27 = vmul.f32 %v1936_v33, %v1860_v46  ;;  %v849_v38 = vpack.c.bf16 %v822_v12, %v821_v24  ;;  %v610_v26 = vsel %vm1946_vm14, %v1786_v61, %v606_v9  ;;  %v620_v21 = vsel %vm1961_vm15, %v1815_v13, %v616_v52  ;;  %v304_v31 = vpop.xlane.xlu2 %303 }
 0x138   :  { %v456_v2 = vmul.f32 %v1838_v6, %v455_v35  ;;  %v446_v29 = vmul.f32 %v1851_v45, %v445_v44  ;;  %vm448_vm3 = vweird.f32 %v1851_v45  ;;  %1179 = vrsqrt.f32 %v1951_v18 }
 0x139   :  { %v685_v19 = vsub.f32 1.5, %v684_v3  ;;  %vm687_vm4 = vweird.f32 %v1762_v22  ;;  %v522_v61 = vmul.f32 %v1940_v16, %v1883_v1  ;;  %v532_v13 = vmul.f32 %v1955_v50, %v1912_v62  ;;  %957 = vmatmul.bf16.vlgmr.msra.gmra.mxu1 %v849_v38  ;;  %vm2003_vm6 = vmor %vm447_vm1, %vm448_vm3 }
 0x13a   :  { %1181 = vrsqrt.f32 %v1953_v10  ;;  %v695_v52 = vsub.f32 1.5, %v694_v41  ;;  %v759_v5 = vmul.f32 %v610_v26, %v1521_v48  ;;  %v760_v43 = vmul.f32 %v620_v21, %v1525_v8  ;;  %vm2047_vm8 = vmor %vm687_vm4, %vm688_vm2 }
 0x13b   :  { %1183 = vrsqrt.f32 %v1967_v25  ;;  %v623_v7 = vmul.f32 %v1936_v33, %v622_v27  ;;  %v369_v35 = vmul.f32 0.03125, %v318_v55  ;;  %v361_v36 = vmul.f32 0.03125, %v302_v34 }
 0x13c   :  { %v362_v60 = vmul.f32 0.03125, %v304_v31  ;;  %v795_v56 = vmul.f32 %v1778_v58, %v759_v5  ;;  %v796_v44 = vmul.f32 %v1778_v58, %v760_v43  ;;  %v450_v48 = vsel %vm2003_vm6, %v1851_v45, %v446_v29 }
 0x13d   :  { %v460_v8 = vsel %vm1992_vm5, %v1838_v6, %v456_v2  ;;  %v523_v30 = vmul.f32 %v1940_v16, %v522_v61  ;;  %v533_v57 = vmul.f32 %v1955_v50, %v532_v13  ;;  %v2018_v24 = vadd.f32 1e-05, %v369_v35 }
 0x13e   :  { %v2020_v23 = vadd.f32 1e-05, %v361_v36  ;;  %v2022_v3 = vpop.eup %1179  ;;  %v686_v51 = vmul.f32 %v1831_v47, %v685_v19  ;;  %v831_v12 = vadd.f32 %v1810_v28, %v795_v56  ;;  %v832_v45 = vadd.f32 %v1810_v28, %v796_v44  ;;  %v320_v9 = vpop.xlane.xlu1 %319 }
 0x13f   :  { %v2027_v59 = vadd.f32 1e-05, %v362_v60  ;;  %vm698_vm7 = vweird.f32 %v1862_v15  ;;  %1185 = vrsqrt.f32 %v2018_v24  ;;  %v743_v6 = vmul.f32 %v450_v48, %v1546_v11  ;;  %v340_v42 = vpop.xlane.xlu0 %339  ;;  %v338_v44 = vpop.xlane.xlu2 %337 }
 0x140   :  { %v2029_v41 = vpop.eup %1181  ;;  %v744_v27 = vmul.f32 %v460_v8, %v1550_v0  ;;  %v696_v26 = vmul.f32 %v1862_v15, %v695_v52  ;;  %v624_v21 = vmul.f32 0.5, %v623_v7  ;;  %v854_v2 = vpack.c.bf16 %v832_v45, %v831_v12 }
 0x141   :  { %v2035_v38 = vpop.eup %1183  ;;  %v632_v55 = vmul.f32 %v2029_v41, %v1953_v10  ;;  %v524_v29 = vmul.f32 0.5, %v523_v30  ;;  %v534_v34 = vmul.f32 0.5, %v533_v57  ;;  %1187 = vrsqrt.f32 %v2020_v23 }
 0x142   :  { %v702_v31 = vmul.f32 %v2035_v38, %v1967_v25  ;;  %vm697_vm9 = vweird.f32 %v1817_v37  ;;  %v712_v0 = vmul.f32 %v2022_v3, %v1951_v18  ;;  %982 = vmatmul.bf16.gmra.mxu2 %v854_v2  ;;  %1189 = vrsqrt.f32 %v2027_v59 }
 0x143   :  { %vm2057_vm10 = vmor %vm697_vm9, %vm698_vm7  ;;  %v633_v22 = vmul.f32 %v2029_v41, %v632_v55  ;;  %v779_v61 = vmul.f32 %v1778_v58, %v743_v6  ;;  %v780_v13 = vmul.f32 %v1778_v58, %v744_v27  ;;  %v625_v37 = vsub.f32 1.5, %v624_v21 }
 0x144   :  { %vm527_vm11 = vweird.f32 %v1883_v1  ;;  %v703_v52 = vmul.f32 %v2035_v38, %v702_v31  ;;  %v690_v5 = vsel %vm2047_vm8, %v1831_v47, %v686_v51  ;;  %v700_v43 = vsel %vm2057_vm10, %v1862_v15, %v696_v26 }
 0x145   :  { %v2072_v7 = vpop.eup %1185  ;;  %v525_v35 = vsub.f32 1.5, %v524_v29  ;;  %v535_v36 = vsub.f32 1.5, %v534_v34  ;;  %v815_v60 = vadd.f32 %v1810_v28, %v779_v61  ;;  %v816_v56 = vadd.f32 %v1810_v28, %v780_v13 }
 0x146   :  { %vm628_vm12 = vweird.f32 %v1936_v33  ;;  %vm537_vm13 = vweird.f32 %v1912_v62  ;;  %v713_v47 = vmul.f32 %v2022_v3, %v712_v0  ;;  %v542_v48 = vmul.f32 %v2072_v7, %v2018_v24 }
 0x147   :  { %v767_v15 = vmul.f32 %v690_v5, %v1529_v49  ;;  %v370_v8 = vmul.f32 0.03125, %v320_v9  ;;  %v2082_v30 = vpop.eup %1187  ;;  %vm528_vm14 = vweird.f32 %v1940_v16  ;;  %v634_v57 = vmul.f32 0.5, %v633_v22 }
 0x148   :  { %v846_v51 = vpack.c.bf16 %v816_v56, %v815_v60  ;;  %v768_v12 = vmul.f32 %v700_v43, %v1542_v63  ;;  %v2086_v45 = vpop.eup %1189  ;;  %v2089_v6 = vmul.f32 %v1936_v33, %v625_v37  ;;  %vm627_vm15 = vweird.f32 %v1860_v46  ;;  %vm2115_vm2 = vmor %vm527_vm11, %vm528_vm14  ;;  %v306_v60 = vpop.xlane.xlu0 %305 }
 0x149   :  { %vm538_vm0 = vweird.f32 %v1955_v50  ;;  %v704_v27 = vmul.f32 0.5, %v703_v52  ;;  %v462_v49 = vmul.f32 %v2082_v30, %v2020_v23  ;;  %v526_v26 = vmul.f32 %v1940_v16, %v525_v35  ;;  %vm2147_vm9 = vmor %vm627_vm15, %vm628_vm12 }
 0x14a   :  { %v536_v21 = vmul.f32 %v1955_v50, %v535_v36  ;;  %v543_v55 = vmul.f32 %v2072_v7, %v542_v48  ;;  %942 = vmatmul.bf16.gmra.mxu0 %v846_v51  ;;  %v803_v63 = vmul.f32 %v1778_v58, %v767_v15  ;;  %v2099_v2 = vmul.f32 0.5, %v713_v47  ;;  %v354_v36 = vpop.xlane.xlu1 %353  ;;  %vm539_vm6 = vmor %vm537_vm13, %vm538_vm0  ;;  %v356_v48 = vpop.xlane.xlu2 %355 }
 0x14b   :  { %vm637_vm1 = vweird.f32 %v1953_v10  ;;  %v472_v29 = vmul.f32 %v2086_v45, %v2027_v59  ;;  %v804_v34 = vmul.f32 %v1778_v58, %v768_v12  ;;  %v2105_v31 = vadd.f32 1e-05, %v370_v8 }
 0x14c   :  { %v635_v11 = vsub.f32 1.5, %v634_v57  ;;  %v463_v0 = vmul.f32 %v2082_v30, %v462_v49  ;;  %v380_v19 = vmul.f32 0.03125, %v340_v42  ;;  %v379_v22 = vmul.f32 0.03125, %v338_v44 }
 0x14d   :  { %v705_v61 = vsub.f32 1.5, %v704_v27  ;;  %v839_v13 = vadd.f32 %v1810_v28, %v803_v63  ;;  %v840_v9 = vadd.f32 %v1810_v28, %v804_v34  ;;  %1191 = vrsqrt.f32 %v2105_v31 }
 0x14e   :  { %vm638_vm3 = vweird.f32 %v2029_v41  ;;  %v544_v52 = vmul.f32 0.5, %v543_v55  ;;  %v2120_v5 = vadd.f32 1e-05, %v380_v19  ;;  %v2122_v43 = vadd.f32 1e-05, %v379_v22 }
 0x14f   :  { %vm718_vm4 = vweird.f32 %v2022_v3  ;;  %vm708_vm5 = vweird.f32 %v2035_v38  ;;  %v473_v42 = vmul.f32 %v2086_v45, %v472_v29  ;;  %v858_v35 = vpack.c.bf16 %v840_v9, %v839_v13  ;;  %vm2163_vm10 = vmor %vm637_vm1, %vm638_vm3 }
 0x150   :  { %v530_v1 = vsel %vm2115_vm2, %v1940_v16, %v526_v26  ;;  %v715_v56 = vsub.f32 1.5, %v2099_v2  ;;  %v636_v44 = vmul.f32 %v2029_v41, %v635_v11  ;;  %vm707_vm7 = vweird.f32 %v1967_v25 }
 0x151   :  { %v464_v47 = vmul.f32 0.5, %v463_v0  ;;  %1193 = vrsqrt.f32 %v2120_v5  ;;  %vm717_vm8 = vweird.f32 %v1951_v18  ;;  %v706_v16 = vmul.f32 %v2035_v38, %v705_v61  ;;  %1002 = vmatmul.bf16.gmra.mxu3 %v858_v35  ;;  %vm2199_vm12 = vmor %vm707_vm7, %vm708_vm5 }
 0x152   :  { %1195 = vrsqrt.f32 %v2122_v43  ;;  %v540_v62 = vsel %vm539_vm6, %v1955_v50, %v536_v21  ;;  %v751_v15 = vmul.f32 %v530_v1, %v1563_v39  ;;  %v545_v57 = vsub.f32 1.5, %v544_v52  ;;  %vm2214_vm14 = vmor %vm717_vm8, %vm718_vm4 }
 0x153   :  { %v752_v51 = vmul.f32 %v540_v62, %v1567_v14  ;;  %v387_v12 = vmul.f32 0.03125, %v354_v36  ;;  %v363_v27 = vmul.f32 0.03125, %v306_v60  ;;  %v2152_v49 = vpop.eup %1191  ;;  %v474_v26 = vmul.f32 0.5, %v473_v42 }
 0x154   :  { %v787_v50 = vmul.f32 %v1778_v58, %v751_v15  ;;  %v388_v21 = vmul.f32 0.03125, %v356_v48  ;;  %v630_v39 = vsel %vm2147_vm9, %v1936_v33, %v2089_v6  ;;  %v465_v14 = vsub.f32 1.5, %v464_v47 }
 0x155   :  { %v552_v55 = vmul.f32 %v2152_v49, %v2105_v31  ;;  %v788_v63 = vmul.f32 %v1778_v58, %v752_v51  ;;  %v2170_v2 = vadd.f32 1e-05, %v387_v12  ;;  %v2173_v34 = vadd.f32 1e-05, %v363_v27  ;;  %v308_v27 = vpop.xlane.xlu1 %307 }
 0x156   :  { %v823_v29 = vadd.f32 %v1810_v28, %v787_v50  ;;  %v2175_v33 = vadd.f32 1e-05, %v388_v21  ;;  %v640_v10 = vsel %vm2163_vm10, %v2029_v41, %v636_v44  ;;  %v761_v19 = vmul.f32 %v630_v39, %v1571_v40 }
 0x157   :  { %v2180_v6 = vpop.eup %1193  ;;  %v553_v11 = vmul.f32 %v2152_v49, %v552_v55  ;;  %v824_v0 = vadd.f32 %v1810_v28, %v788_v63  ;;  %1197 = vrsqrt.f32 %v2170_v2  ;;  %v716_v61 = vmul.f32 %v2022_v3, %v715_v56  ;;  %v322_v55 = vpop.xlane.xlu2 %321 }
 0x158   :  { %v2186_v22 = vpop.eup %1195  ;;  %v475_v13 = vsub.f32 1.5, %v474_v26  ;;  %v652_v9 = vmul.f32 %v2180_v6, %v2120_v5  ;;  %1199 = vrsqrt.f32 %v2173_v34  ;;  %vm468_vm11 = vweird.f32 %v2082_v30 }
 0x159   :  { %v554_v41 = vmul.f32 0.5, %v553_v11  ;;  %v642_v37 = vmul.f32 %v2186_v22, %v2122_v43  ;;  %v850_v52 = vpack.c.bf16 %v824_v0, %v823_v29  ;;  %v2204_v42 = vmul.f32 %v2072_v7, %v545_v57 }
 0x15a   :  { %vm478_vm13 = vweird.f32 %v2086_v45  ;;  %v653_v35 = vmul.f32 %v2180_v6, %v652_v9  ;;  %1201 = vrsqrt.f32 %v2175_v33  ;;  %v762_v1 = vmul.f32 %v640_v10, %v1584_v53 }
 0x15b   :  { %vm548_vm15 = vweird.f32 %v2072_v7  ;;  %v2220_v36 = vmul.f32 %v2082_v30, %v465_v14  ;;  %vm467_vm0 = vweird.f32 %v2020_v23  ;;  %v643_v60 = vmul.f32 %v2186_v22, %v642_v37  ;;  %962 = vmatmul.bf16.gmra.mxu1 %v850_v52  ;;  %v324_v14 = vpop.xlane.xlu0 %323 }
 0x15c   :  { %v797_v53 = vmul.f32 %v1778_v58, %v761_v19  ;;  %v710_v18 = vsel %vm2199_vm12, %v2035_v38, %v706_v16  ;;  %v2229_v56 = vmul.f32 %v2086_v45, %v475_v13  ;;  %vm477_vm1 = vweird.f32 %v2027_v59  ;;  %vm2272_vm10 = vmor %vm467_vm0, %vm468_vm11 }
 0x15d   :  { %v798_v44 = vmul.f32 %v1778_v58, %v762_v1  ;;  %v720_v47 = vsel %vm2214_vm14, %v2022_v3, %v716_v61  ;;  %v769_v48 = vmul.f32 %v710_v18, %v1588_v17  ;;  %v2237_v62 = vpop.eup %1197  ;;  %vm547_vm2 = vweird.f32 %v2018_v24  ;;  %vm2284_vm14 = vmor %vm477_vm1, %vm478_vm13 }
 0x15e   :  { %v555_v15 = vsub.f32 1.5, %v554_v41  ;;  %v654_v8 = vmul.f32 0.5, %v653_v35  ;;  %v644_v38 = vmul.f32 0.5, %v643_v60  ;;  %v770_v16 = vmul.f32 %v720_v47, %v1592_v54  ;;  %v2241_v57 = vpop.eup %1199  ;;  %vm2300_vm11 = vmor %vm547_vm2, %vm548_vm15 }
 0x15f   :  { %vm557_vm3 = vweird.f32 %v2105_v31  ;;  %vm558_vm4 = vweird.f32 %v2152_v49  ;;  %v722_v3 = vmul.f32 %v2237_v62, %v2170_v2  ;;  %v833_v17 = vadd.f32 %v1810_v28, %v797_v53  ;;  %v2562_v53 = vld [vmem:[#allocation16_spill] sm:$0xff] }
 0x160   :  { %v834_v51 = vadd.f32 %v1810_v28, %v798_v44  ;;  %vm658_vm5 = vweird.f32 %v2180_v6  ;;  %vm647_vm6 = vweird.f32 %v2122_v43  ;;  %vm648_vm7 = vweird.f32 %v2186_v22  ;;  %v2255_v26 = vpop.eup %1201  ;;  %vm2315_vm15 = vmor %vm557_vm3, %vm558_vm4 }
 0x161   :  { %v482_v54 = vmul.f32 %v2241_v57, %v2173_v34  ;;  %v805_v12 = vmul.f32 %v1778_v58, %v769_v48  ;;  %v645_v50 = vsub.f32 1.5, %v644_v38  ;;  %v723_v21 = vmul.f32 %v2237_v62, %v722_v3  ;;  %vm2325_vm1 = vmor %vm647_vm6, %vm648_vm7 }
 0x162   :  { %v855_v39 = vpack.c.bf16 %v834_v51, %v833_v17  ;;  %v806_v46 = vmul.f32 %v1778_v58, %v770_v16  ;;  %v556_v63 = vmul.f32 %v2152_v49, %v555_v15  ;;  %v655_v29 = vsub.f32 1.5, %v654_v8  ;;  %v2552_v17 = vld [vmem:[#allocation12_spill] sm:$0xff] }
 0x163   :  { %vm657_vm8 = vweird.f32 %v2120_v5  ;;  %v483_v10 = vmul.f32 %v2241_v57, %v482_v54  ;;  %v732_v11 = vmul.f32 %v2255_v26, %v2175_v33  ;;  %v724_v0 = vmul.f32 0.5, %v723_v21 }
 0x164   :  { %987 = vmatmul.bf16.gmra.mxu2 %v855_v39  ;;  %v841_v19 = vadd.f32 %v1810_v28, %v805_v12  ;;  %v842_v61 = vadd.f32 %v1810_v28, %v806_v46  ;;  %v364_v13 = vmul.f32 0.03125, %v308_v27  ;;  %vm727_vm9 = vweird.f32 %v2170_v2  ;;  %vm2349_vm3 = vmor %vm657_vm8, %vm658_vm5  ;;  %v2438_v46 = vld [vmem:[%s2482_s4] ss:$0 sm:$0xff]  ;;  %s1318_s4 = smov [#allocation8]  }
 0x165   :  { %v484_v9 = vmul.f32 0.5, %v483_v10  ;;  %v733_v41 = vmul.f32 %v2255_v26, %v732_v11  ;;  %v372_v37 = vmul.f32 0.03125, %v324_v14  ;;  %v371_v52 = vmul.f32 0.03125, %v322_v55  ;;  %v2558_v14 = vld [vmem:[#allocation14_spill] sm:$0xff]  ;;  %s1054_s12 = sshll.u32 %s1318_s4, 4  ;;  %s1055_s12 = int_to_ptr.vmem [resolvable:$true] %s1054_s12 }
 0x166   :  { %v646_v35 = vmul.f32 %v2186_v22, %v645_v50  ;;  %v725_v1 = vsub.f32 1.5, %v724_v0  ;;  %vm737_vm12 = vweird.f32 %v2175_v33  ;;  %v859_v25 = vpack.c.bf16 %v842_v61, %v841_v19 }
 0x167   :  { %v2278_v60 = vadd.f32 1e-05, %v364_v13  ;;  %v734_v23 = vmul.f32 0.5, %v733_v41  ;;  %v2288_v18 = vadd.f32 1e-05, %v372_v37  ;;  %v470_v47 = vsel %vm2272_vm10, %v2082_v30, %v2220_v36 }
 0x168   :  { %v2290_v44 = vadd.f32 1e-05, %v371_v52  ;;  %v656_v48 = vmul.f32 %v2180_v6, %v655_v29  ;;  %vm728_vm13 = vweird.f32 %v2237_v62  ;;  %1007 = vmatmul.bf16.gmra.mxu3 %v859_v25  ;;  %v480_v30 = vsel %vm2284_vm14, %v2086_v45, %v2229_v56  ;;  %v2559_v52 = vld [vmem:[#allocation15_spill] sm:$0xff] }
 0x169   :  { %1203 = vrsqrt.f32 %v2278_v60  ;;  %v485_v36 = vsub.f32 1.5, %v484_v9  ;;  %v735_v15 = vsub.f32 1.5, %v734_v23  ;;  %vm738_vm0 = vweird.f32 %v2255_v26  ;;  %vm2367_vm5 = vmor %vm727_vm9, %vm728_vm13 }
 0x16a   :  { %1205 = vrsqrt.f32 %v2288_v18  ;;  %v726_v31 = vmul.f32 %v2237_v62, %v725_v1  ;;  %vm487_vm2 = vweird.f32 %v2173_v34  ;;  %v745_v56 = vmul.f32 %v470_v47, %v1605_v4  ;;  %vm2379_vm6 = vmor %vm737_vm12, %vm738_vm0 }
 0x16b   :  { %1207 = vrsqrt.f32 %v2290_v44  ;;  %v746_v8 = vmul.f32 %v480_v30, %v1609_v20  ;;  %v736_v38 = vmul.f32 %v2255_v26, %v735_v15  ;;  %v550_v43 = vsel %vm2300_vm11, %v2072_v7, %v2204_v42 }
 0x16c   :  { %v560_v16 = vsel %vm2315_vm15, %v2152_v49, %v556_v63  ;;  %v650_v3 = vsel %vm2325_vm1, %v2186_v22, %v646_v35  ;;  %v781_v20 = vmul.f32 %v1778_v58, %v745_v56  ;;  %v753_v42 = vmul.f32 %v550_v43, %v1613_v32  ;;  %v2553_v22 = vld [vmem:[#allocation13_spill] sm:$0xff] }
 0x16d   :  { %v782_v7 = vmul.f32 %v1778_v58, %v746_v8  ;;  %v754_v49 = vmul.f32 %v560_v16, %v2552_v17  ;;  %v486_v51 = vmul.f32 %v2241_v57, %v485_v36  ;;  %vm488_vm4 = vweird.f32 %v2241_v57  ;;  %v2563_v56 = vld [vmem:[#allocation17_spill] sm:$0xff] }
 0x16e   :  { %v660_v5 = vsel %vm2349_vm3, %v2180_v6, %v656_v48  ;;  %v763_v54 = vmul.f32 %v650_v3, %v2553_v22  ;;  %v817_v32 = vadd.f32 %v1810_v28, %v781_v20  ;;  %v789_v21 = vmul.f32 %v1778_v58, %v753_v42  ;;  %vm2404_vm9 = vmor %vm487_vm2, %vm488_vm4  ;;  %v2564_v42 = vld [vmem:[#allocation19_spill] sm:$0xff]  ;;  %v2566_v22 = vld [vmem:[#allocation18_spill] sm:$0xff] }
 0x16f   :  { %v1204_v12 = vpop.eup %1203  ;;  %v818_v50 = vadd.f32 %v1810_v28, %v782_v7  ;;  %v790_v39 = vmul.f32 %v1778_v58, %v754_v49  ;;  %vm497_vm7 = vweird.f32 %v2278_v60  ;;  %v764_v55 = vmul.f32 %v660_v5, %v2558_v14 }
 0x170   :  { %v1206_v6 = vpop.eup %1205  ;;  %v492_v2 = vmul.f32 %v1204_v12, %v2278_v60  ;;  %v799_v63 = vmul.f32 %v1778_v58, %v763_v54  ;;  %v730_v29 = vsel %vm2367_vm5, %v2237_v62, %v726_v31  ;;  %vm498_vm8 = vweird.f32 %v1204_v12  ;;  %v2565_v60 = vld [vmem:[#allocation20_spill] sm:$0xff] }
 0x171   :  { %v1208_v10 = vpop.eup %1207  ;;  %v572_v33 = vmul.f32 %v1206_v6, %v2288_v18  ;;  %v847_v11 = vpack.c.bf16 %v818_v50, %v817_v32  ;;  %v740_v0 = vsel %vm2379_vm6, %v2255_v26, %v736_v38  ;;  %v825_v13 = vadd.f32 %v1810_v28, %v789_v21  ;;  %vm499_vm14 = vmor %vm497_vm7, %vm498_vm8 }
 0x172   :  { %v493_v19 = vmul.f32 %v1204_v12, %v492_v2  ;;  %v562_v61 = vmul.f32 %v1208_v10, %v2290_v44  ;;  %v826_v9 = vadd.f32 %v1810_v28, %v790_v39  ;;  %v800_v62 = vmul.f32 %v1778_v58, %v764_v55 }
 0x173   :  { %v573_v41 = vmul.f32 %v1206_v6, %v572_v33  ;;  %947 = vmatmul.bf16.gmra.mxu0 %v847_v11  ;;  %v835_v37 = vadd.f32 %v1810_v28, %v799_v63  ;;  %v771_v40 = vmul.f32 %v730_v29, %v2559_v52  ;;  %v772_v23 = vmul.f32 %v740_v0, %v2562_v53 }
 0x174   :  { %v494_v35 = vmul.f32 0.5, %v493_v19  ;;  %v563_v1 = vmul.f32 %v1208_v10, %v562_v61  ;;  %v851_v25 = vpack.c.bf16 %v826_v9, %v825_v13  ;;  %v836_v59 = vadd.f32 %v1810_v28, %v800_v62 }
 0x175   :  { %v574_v47 = vmul.f32 0.5, %v573_v41  ;;  %v807_v48 = vmul.f32 %v1778_v58, %v771_v40  ;;  %v490_v30 = vsel %vm2404_vm9, %v2241_v57, %v486_v51  ;;  %vm578_vm10 = vweird.f32 %v1206_v6 }
 0x176   :  { %v495_v24 = vsub.f32 1.5, %v494_v35  ;;  %v564_v34 = vmul.f32 0.5, %v563_v1  ;;  %967 = vmatmul.bf16.gmra.mxu1 %v851_v25  ;;  %v808_v36 = vmul.f32 %v1778_v58, %v772_v23  ;;  %v856_v45 = vpack.c.bf16 %v836_v59, %v835_v37 }
 0x177   :  { %v575_v15 = vsub.f32 1.5, %v574_v47  ;;  %v843_v31 = vadd.f32 %v1810_v28, %v807_v48  ;;  %v747_v8 = vmul.f32 %v490_v30, %v2563_v56  ;;  %vm568_vm12 = vweird.f32 %v1208_v10 }
 0x178   :  { %v496_v38 = vmul.f32 %v1204_v12, %v495_v24  ;;  %v565_v43 = vsub.f32 1.5, %v564_v34  ;;  %v844_v16 = vadd.f32 %v1810_v28, %v808_v36  ;;  %vm577_vm11 = vweird.f32 %v2288_v18  ;;  %992 = vmatmul.bf16.gmra.mxu2 %v856_v45 }
 0x179   :  { %v576_v57 = vmul.f32 %v1206_v6, %v575_v15  ;;  %vm579_vm13 = vmor %vm577_vm11, %vm578_vm10  ;;  %vm567_vm15 = vweird.f32 %v2290_v44  ;;  %v783_v49 = vmul.f32 %v1778_v58, %v747_v8 }
 0x17a   :  { %v500_v3 = vsel %vm499_vm14, %v1204_v12, %v496_v38  ;;  %v566_v4 = vmul.f32 %v1208_v10, %v565_v43  ;;  %v860_v20 = vpack.c.bf16 %v844_v16, %v843_v31  ;;  %vm569_vm0 = vmor %vm567_vm15, %vm568_vm12 }
 0x17b   :  { %v580_v7 = vsel %vm579_vm13, %v1206_v6, %v576_v57  ;;  %v748_v17 = vmul.f32 %v500_v3, %v2564_v42  ;;  %v819_v27 = vadd.f32 %v1810_v28, %v783_v49 }
 0x17c   :  { %v570_v51 = vsel %vm569_vm0, %v1208_v10, %v566_v4  ;;  %1012 = vmatmul.bf16.gmra.mxu3 %v860_v20  ;;  %v756_v5 = vmul.f32 %v580_v7, %v2565_v60 }
 0x17d   :  { %v784_v18 = vmul.f32 %v1778_v58, %v748_v17  ;;  %v755_v54 = vmul.f32 %v570_v51, %v2566_v22 }
 0x17e   :  { %v792_v12 = vmul.f32 %v1778_v58, %v756_v5 }
 0x17f   :  { %v820_v44 = vadd.f32 %v1810_v28, %v784_v18  ;;  %v791_v32 = vmul.f32 %v1778_v58, %v755_v54 }
 0x180   :  { %v828_v50 = vadd.f32 %v1810_v28, %v792_v12 }
 0x181   :  { %v848_v21 = vpack.c.bf16 %v820_v44, %v819_v27  ;;  %v827_v39 = vadd.f32 %v1810_v28, %v791_v32 }
 0x183   :  { %952 = vmatmul.bf16.gmra.mxu0 %v848_v21  ;;  %v852_v6 = vpack.c.bf16 %v828_v50, %v827_v39 }
 0x186   :  { %972 = vmatmul.bf16.gmra.mxu1 %v852_v6 }
 0x1aa   :  { %v978_v2 = vpop.f32.mrf.mxu2 }
 0x1ab   :  { %v979_v14 = vadd.f32 %v2438_v46, %v978_v2 }
 0x1ad   :  { %1034 = vst [vmem:[#allocation8 + $0x80] sm:$0xff] %v979_v14 }
 0x1af   :  { %v998_v55 = vpop.f32.mrf.mxu3 }
 0x1b0   :  { %v999_v58 = vadd.f32 %v2438_v46, %v998_v55 }
 0x1b2   :  { %1042 = vst [vmem:[#allocation8 + $0xc0] sm:$0xff] %v999_v58  ;;  %v980_v29 = vpop.f32.mrf.mxu2 }
 0x1b3   :  { %v938_v63 = vpop.f32.mrf.mxu0  ;;  %v981_v10 = vadd.f32 %v2438_v46, %v980_v29 }
 0x1b4   :  { %v939_v28 = vadd.f32 %v2438_v46, %v938_v63 }
 0x1b5   :  { %1035 = vst [vmem:[#allocation8 + $0x88] sm:$0xff] %v981_v10 }
 0x1b6   :  { %1018 = vst [vmem:[#allocation8] sm:$0xff] %v939_v28  ;;  %v958_v33 = vpop.f32.mrf.mxu1 }
 0x1b7   :  { %v959_v11 = vadd.f32 %v2438_v46, %v958_v33  ;;  %v1000_v0 = vpop.f32.mrf.mxu3 }
 0x1b8   :  { %v1001_v19 = vadd.f32 %v2438_v46, %v1000_v0 }
 0x1b9   :  { %1026 = vst [vmem:[#allocation8 + $0x40] sm:$0xff] %v959_v11 }
 0x1ba   :  { %1043 = vst [vmem:[#allocation8 + $0xc8] sm:$0xff] %v1001_v19 }
 0x1bb   :  { %v940_v61 = vpop.f32.mrf.mxu0 }
 0x1bc   :  { %v941_v13 = vadd.f32 %v2438_v46, %v940_v61 }
 0x1be   :  { %1019 = vst [vmem:[#allocation8 + $0x8] sm:$0xff] %v941_v13  ;;  %v960_v9 = vpop.f32.mrf.mxu1 }
 0x1bf   :  { %v961_v41 = vadd.f32 %v2438_v46, %v960_v9 }
 0x1c1   :  { %1027 = vst [vmem:[#allocation8 + $0x48] sm:$0xff] %v961_v41 }
 0x1c5   :  { %v983_v62 = vpop.f32.mrf.mxu2 }
 0x1c6   :  { %v984_v37 = vadd.f32 %v2438_v46, %v983_v62 }
 0x1c7   :  { %v943_v52 = vpop.f32.mrf.mxu0 }
 0x1c8   :  { %v944_v40 = vadd.f32 %v2438_v46, %v943_v52  ;;  %1036 = vst [vmem:[#allocation8 + $0x90] sm:$0xff] %v984_v37 }
 0x1ca   :  { %1020 = vst [vmem:[#allocation8 + $0x10] sm:$0xff] %v944_v40 }
 0x1cd   :  { %v985_v26 = vpop.f32.mrf.mxu2 }
 0x1ce   :  { %v986_v35 = vadd.f32 %v2438_v46, %v985_v26 }
 0x1cf   :  { %v945_v1 = vpop.f32.mrf.mxu0 }
 0x1d0   :  { %v946_v25 = vadd.f32 %v2438_v46, %v945_v1  ;;  %1037 = vst [vmem:[#allocation8 + $0x98] sm:$0xff] %v986_v35 }
 0x1d2   :  { %1021 = vst [vmem:[#allocation8 + $0x18] sm:$0xff] %v946_v25 }
 0x1d4   :  { %v1003_v53 = vpop.f32.mrf.mxu3 }
 0x1d5   :  { %v1004_v23 = vadd.f32 %v2438_v46, %v1003_v53 }
 0x1d7   :  { %1044 = vst [vmem:[#allocation8 + $0xd0] sm:$0xff] %v1004_v23 }
 0x1d8   :  { %v963_v47 = vpop.f32.mrf.mxu1 }
 0x1d9   :  { %v964_v59 = vadd.f32 %v2438_v46, %v963_v47 }
 0x1db   :  { %1028 = vst [vmem:[#allocation8 + $0x50] sm:$0xff] %v964_v59 }
 0x1dc   :  { %v1005_v48 = vpop.f32.mrf.mxu3 }
 0x1dd   :  { %v1006_v30 = vadd.f32 %v2438_v46, %v1005_v48 }
 0x1df   :  { %1045 = vst [vmem:[#allocation8 + $0xd8] sm:$0xff] %v1006_v30 }
 0x1e0   :  { %v965_v24 = vpop.f32.mrf.mxu1 }
 0x1e1   :  { %v966_v34 = vadd.f32 %v2438_v46, %v965_v24 }
 0x1e3   :  { %1029 = vst [vmem:[#allocation8 + $0x58] sm:$0xff] %v966_v34 }
 0x1e7   :  { %v988_v36 = vpop.f32.mrf.mxu2 }
 0x1e8   :  { %v989_v15 = vadd.f32 %v2438_v46, %v988_v36 }
 0x1ea   :  { %1038 = vst [vmem:[#allocation8 + $0xa0] sm:$0xff] %v989_v15 }
 0x1eb   :  { %v1008_v45 = vpop.f32.mrf.mxu3 }
 0x1ec   :  { %v1009_v31 = vadd.f32 %v2438_v46, %v1008_v45 }
 0x1ee   :  { %1046 = vst [vmem:[#allocation8 + $0xe0] sm:$0xff] %v1009_v31 }
 0x1ef   :  { %v990_v8 = vpop.f32.mrf.mxu2 }
 0x1f0   :  { %v948_v56 = vpop.f32.mrf.mxu0  ;;  %v991_v43 = vadd.f32 %v2438_v46, %v990_v8 }
 0x1f1   :  { %v949_v38 = vadd.f32 %v2438_v46, %v948_v56 }
 0x1f2   :  { %1039 = vst [vmem:[#allocation8 + $0xa8] sm:$0xff] %v991_v43 }
 0x1f3   :  { %1022 = vst [vmem:[#allocation8 + $0x20] sm:$0xff] %v949_v38  ;;  %v968_v16 = vpop.f32.mrf.mxu1  ;;  %v1010_v57 = vpop.f32.mrf.mxu3 }
 0x1f4   :  { %v969_v3 = vadd.f32 %v2438_v46, %v968_v16  ;;  %v1011_v4 = vadd.f32 %v2438_v46, %v1010_v57 }
 0x1f6   :  { %1030 = vst [vmem:[#allocation8 + $0x60] sm:$0xff] %v969_v3 }
 0x1f7   :  { %1047 = vst [vmem:[#allocation8 + $0xe8] sm:$0xff] %v1011_v4 }
 0x1f8   :  { %v950_v20 = vpop.f32.mrf.mxu0 }
 0x1f9   :  { %v951_v7 = vadd.f32 %v2438_v46, %v950_v20 }
 0x1fb   :  { %1023 = vst [vmem:[#allocation8 + $0x28] sm:$0xff] %v951_v7  ;;  %v970_v42 = vpop.f32.mrf.mxu1  ;;  %v993_v17 = vpop.f32.mrf.mxu2 }
 0x1fc   :  { %v971_v49 = vadd.f32 %v2438_v46, %v970_v42  ;;  %v994_v51 = vadd.f32 %v2438_v46, %v993_v17 }
 0x1fe   :  { %1031 = vst [vmem:[#allocation8 + $0x68] sm:$0xff] %v971_v49 }
 0x1ff   :  { %1040 = vst [vmem:[#allocation8 + $0xb0] sm:$0xff] %v994_v51  ;;  %v1013_v60 = vpop.f32.mrf.mxu3 }
 0x200   :  { %v1014_v5 = vadd.f32 %v2438_v46, %v1013_v60  ;;  %v953_v18 = vpop.f32.mrf.mxu0 }
 0x201   :  { %v954_v22 = vadd.f32 %v2438_v46, %v953_v18 }
 0x202   :  { %1048 = vst [vmem:[#allocation8 + $0xf0] sm:$0xff] %v1014_v5 }
 0x203   :  { %1024 = vst [vmem:[#allocation8 + $0x30] sm:$0xff] %v954_v22  ;;  %v973_v54 = vpop.f32.mrf.mxu1  ;;  %v995_v12 = vpop.f32.mrf.mxu2 }
 0x204   :  { %v974_v27 = vadd.f32 %v2438_v46, %v973_v54  ;;  %v996_v44 = vadd.f32 %v2438_v46, %v995_v12 }
 0x206   :  { %1032 = vst [vmem:[#allocation8 + $0x70] sm:$0xff] %v974_v27 }
 0x207   :  { %1041 = vst [vmem:[#allocation8 + $0xb8] sm:$0xff] %v996_v44  ;;  %v1015_v32 = vpop.f32.mrf.mxu3 }
 0x208   :  { %v1016_v50 = vadd.f32 %v2438_v46, %v1015_v32  ;;  %v955_v21 = vpop.f32.mrf.mxu0 }
 0x209   :  { %v956_v39 = vadd.f32 %v2438_v46, %v955_v21 }
 0x20a   :  { %1049 = vst [vmem:[#allocation8 + $0xf8] sm:$0xff] %v1016_v50 }
 0x20b   :  { %1025 = vst [vmem:[#allocation8 + $0x38] sm:$0xff] %v956_v39  ;;  %v975_v6 = vpop.f32.mrf.mxu1 }
 0x20c   :  { %v976_v2 = vadd.f32 %v2438_v46, %v975_v6 }
 0x20e   :  { %1033 = vst [vmem:[#allocation8 + $0x78] sm:$0xff] %v976_v2 }
 0x20f   :  { %1062 = dma.vmem_to_hbm [thread:$0]  %s1055_s12, 4096, %s1057_s15, [#allocation4], %s1313_s28, %s1313_s28, %s1314_s29  }
 0x210   :  { %1309 = dma.done.wait [#allocation4], 4096  }
 0x211   :  { %1310 = vsyncadd [#allocation4], 4294963200 }
 0x212   :  { %1067 = vsyncpa [#allocation3], 1 }
 0x213   :  { %1068 = vsyncpa [#allocation6], 1 }
 0x214   :  { %1069 = vsyncpa [#allocation4], 1 }

</bundles_post_ra>
